<compile_context>
chip_gen: v6e
topology: v6e:2x2x1
jax: 0.10.0
libtpu: 0.0.40
codegen_flags: <defaults>
</compile_context>

<pallas_src>
import functools

import numpy as np
import jax
import jax.numpy as jnp
from jax.experimental import pallas as pl
from jax.experimental.pallas import tpu as pltpu


def _round_up(n, m):
    return ((n + m - 1) // m) * m


def _pad2(x, rows, cols):
    return jnp.pad(x, ((0, rows - x.shape[0]), (0, cols - x.shape[1])))


def _choose_tm(n_dst, tm_max):
    """Per-layer dst tile: keep >= 2 dst tiles (v7x megacore 'parallel' axis) while
    staying a multiple of 16 (bf16 sublane packing) and <= tm_max."""
    tm = _round_up(max((n_dst + 1) // 2, 16), 16)
    return min(tm, tm_max)


def _vmem_limit_bytes():
    """Generation-aware scoped-VMEM budget: ~3/4 of physical VMEM, capped at 96 MiB
    (v5e/v6e have 128 MiB per core, v7x only 64 MiB -> ~48 MiB budget)."""
    try:
        cap = int(pltpu.get_tpu_info().vmem_capacity_bytes)
    except Exception:
        cap = 64 * 1024 * 1024
    return int(min(cap * 3 // 4, 96 * 1024 * 1024))


def _sage_conv_kernel(kidx_ref, cnt_ref, a_ref, hsrc_ref, hdst_ref, wself_ref,
                      wneigh_ref, b_ref, out_ref, acc_ref, self_ref, *,
                      apply_relu: bool):
    """One grid step of SAGEConv('mean') over the compacted (dst tile, nnz K tile) grid.

    kidx_ref : SMEM [n_m * ns] int32   nonzero K-tile indices per dst tile (prefetch)
    cnt_ref  : SMEM [n_m]      int32   number of valid entries per dst tile (prefetch)
    a_ref    : [TM, TK]  bf16          row-normalized adjacency tile (data-dep index)
    hsrc_ref : [TK, Fi]  bf16          source-feature tile (data-dep index)
    hdst_ref : [TM, Fi]  bf16          destination-feature tile (dst view of H)
    wself_ref: [Fi, Fo]  bf16
    wneigh_ref:[Fi, Fo]  bf16
    b_ref    : [1,  Fo]  f32
    out_ref  : [TM, Fo]  out dtype (bf16 hidden layers / f32 last layer)
    acc_ref  : [TM, Fi]  f32           neighbor-mean accumulator (scratch)
    self_ref : [TM, Fo]  f32           hoisted H_dst @ W_self + bias (scratch)
    """
    i = pl.program_id(0)
    s = pl.program_id(1)
    ns = pl.num_programs(1)

    @pl.when(s == 0)
    def _():
        acc_ref[...] = jnp.zeros_like(acc_ref)
        # Hoisted self projection + bias: overlaps the neighbor reduction instead of
        # serializing two extra matmuls into the last-step epilogue.
        self_ref[...] = (jnp.dot(hdst_ref[...], wself_ref[...],
                                 preferred_element_type=jnp.float32)
                         + b_ref[...])

    # Only the first cnt[i] grid steps carry real (nonzero) adjacency tiles; padding
    # steps repeat the previous block index (no re-DMA) and skip the MXU work here.
    @pl.when(s < cnt_ref[i])
    def _():
        acc_ref[...] += jnp.dot(a_ref[...], hsrc_ref[...],
                                preferred_element_type=jnp.float32)

    @pl.when(s == ns - 1)
    def _():
        out = self_ref[...] + jnp.dot(acc_ref[...].astype(wneigh_ref.dtype),
                                      wneigh_ref[...],
                                      preferred_element_type=jnp.float32)
        if apply_relu:
            out = jnp.maximum(out, 0.0)
        out_ref[...] = out.astype(out_ref.dtype)


def prepare_block(a_norm, n_dst_p, n_src_p, tm, tk, compute_dtype):
    """Host-side block preprocessing (done once per sampled block, like DGL block
    construction): pad the dense row-normalized adjacency and build the compacted
    per-dst-tile list of nonzero K-tile indices + counts."""
    a = np.asarray(a_norm, dtype=np.float32)
    n_dst, n_src = a.shape
    a_p = np.zeros((n_dst_p, n_src_p), dtype=np.float32)
    a_p[:n_dst, :n_src] = a

    n_m, n_k = n_dst_p // tm, n_src_p // tk
    blk_nz = a_p.reshape(n_m, tm, n_k, tk).any(axis=(1, 3))      # (n_m, n_k) bool
    cnt = blk_nz.sum(axis=1).astype(np.int32)                    # (n_m,)
    max_nnz = max(int(cnt.max()), 1)

    kidx = np.zeros((n_m, max_nnz), dtype=np.int32)
    for i in range(n_m):
        nz = np.nonzero(blk_nz[i])[0]
        if nz.size:
            kidx[i, :nz.size] = nz
            kidx[i, nz.size:] = nz[-1]       # repeat last valid index -> no re-fetch
    return (jnp.asarray(a_p.astype(np.float32), dtype=compute_dtype),
            jnp.asarray(kidx.reshape(-1)),
            jnp.asarray(cnt),
            max_nnz)


def sage_conv_padded(a_p, kidx, cnt, max_nnz, h_p, ws_p, wn_p, b_p, *,
                     tm, tk, apply_relu, out_dtype, vmem_limit):
    """SAGEConv('mean') on pre-padded operands:
       out = H_dst @ W_self + (A_norm @ H_src) @ W_neigh + bias   (+ ReLU)."""
    n_dst_p, n_src_p = a_p.shape
    f_in_p = h_p.shape[1]
    f_out_p = ws_p.shape[1]
    n_m = n_dst_p // tm
    ns = max_nnz

    kernel = functools.partial(_sage_conv_kernel, apply_relu=apply_relu)

    # Data-dependent K index: nonzero-tile list is scalar-prefetched into SMEM.
    def a_map(i, s, kI, cN):
        return (i, kI[i * ns + s])

    def hsrc_map(i, s, kI, cN):
        return (kI[i * ns + s], 0)

    grid_spec = pltpu.PrefetchScalarGridSpec(
        num_scalar_prefetch=2,
        grid=(n_m, ns),
        in_specs=[
            pl.BlockSpec((tm, tk), a_map),                            # A tile
            pl.BlockSpec((tk, f_in_p), hsrc_map),                     # H, src view
            pl.BlockSpec((tm, f_in_p), lambda i, s, kI, cN: (i, 0)),  # H, dst view
            pl.BlockSpec((f_in_p, f_out_p), lambda i, s, kI, cN: (0, 0)),  # W_self
            pl.BlockSpec((f_in_p, f_out_p), lambda i, s, kI, cN: (0, 0)),  # W_neigh
            pl.BlockSpec((1, f_out_p), lambda i, s, kI, cN: (0, 0)),       # bias
        ],
        out_specs=pl.BlockSpec((tm, f_out_p), lambda i, s, kI, cN: (i, 0)),
        scratch_shapes=[pltpu.VMEM((tm, f_in_p), jnp.float32),   # neighbor-mean acc
                        pltpu.VMEM((tm, f_out_p), jnp.float32)],  # hoisted self proj
    )
    return pl.pallas_call(
        kernel,
        out_shape=jax.ShapeDtypeStruct((n_dst_p, f_out_p), out_dtype),
        grid_spec=grid_spec,
        compiler_params=pltpu.CompilerParams(
            dimension_semantics=("parallel", "arbitrary"),
            vmem_limit_bytes=vmem_limit),
    )(kidx, cnt, a_p, h_p, h_p, ws_p, wn_p, b_p)


def dist_sage_forward(blocks, x, params, *, tm_max=256, tk=256,
                      compute_dtype=jnp.bfloat16):
    """Mirrors DistSAGE.forward: h = x; for each (layer, block): h = layer(block, h);
    ReLU + (identity) dropout on all but the last layer.  Hidden activations stay
    padded & bf16 between layers; only the final result is sliced to logical shape."""
    n_layers = len(params)
    vmem_limit = _vmem_limit_bytes()

    # Pad/cast the static weights once (outside the per-layer compute).
    prepped = []
    for p in params:
        f_in, f_out = p["w_self"].shape
        f_in_p, f_out_p = _round_up(f_in, 128), _round_up(f_out, 128)
        prepped.append(dict(
            ws=_pad2(p["w_self"].astype(compute_dtype), f_in_p, f_out_p),
            wn=_pad2(p["w_neigh"].astype(compute_dtype), f_in_p, f_out_p),
            b=_pad2(p["bias"].astype(jnp.float32), 1, f_out_p),
            f_in_p=f_in_p, f_out_p=f_out_p, f_out=f_out))

    h = x.astype(compute_dtype)   # padded (or logical, for layer 0) activations

    for li, (blk, pp) in enumerate(zip(blocks, prepped)):
        n_dst, n_src = blk.shape
        assert n_dst <= n_src, "DGL block convention: dst nodes are a prefix of src"
        last = (li == n_layers - 1)

        tm = _choose_tm(n_dst, tm_max)
        n_dst_p = _round_up(n_dst, tm)
        # Src padding must cover the (possibly already padded) activations and the
        # padded dst range (h_dst view); extra all-zero column tiles cost nothing —
        # the compacted grid never fetches them.
        n_src_p = _round_up(max(n_src, h.shape[0], n_dst_p), tk)

        row_pad = n_src_p - h.shape[0]
        col_pad = pp["f_in_p"] - h.shape[1]
        if row_pad or col_pad:
            h = jnp.pad(h, ((0, row_pad), (0, col_pad)))

        a_p, kidx, cnt, max_nnz = prepare_block(blk, n_dst_p, n_src_p, tm, tk,
                                                compute_dtype)
        out_dtype = jnp.float32 if last else compute_dtype
        h = sage_conv_padded(a_p, kidx, cnt, max_nnz, h,
                             pp["ws"], pp["wn"], pp["b"],
                             tm=tm, tk=tk, apply_relu=not last,
                             out_dtype=out_dtype, vmem_limit=vmem_limit)
        # dropout: identity (eval-mode inference)

    n_dst_last = blocks[-1].shape[0]
    f_out_last = prepped[-1]["f_out"]
    return h[:n_dst_last, :f_out_last]


def make_block(key, n_dst, n_src, p_edge=0.3, window=100):
    """Dense row-normalized adjacency [n_dst, n_src] for the 'mean' aggregator.

    Banded sampled frontier: dst node i may connect to src nodes in [i, i+window),
    plus a guaranteed self-loop.  This leaves some dst tiles with fewer nonzero
    adjacency K-tiles than others, exercising the compacted data-dependent grid."""
    assert n_dst <= n_src
    col = jnp.arange(n_src)[None, :]
    row = jnp.arange(n_dst)[:, None]
    band = (col >= row) & (col < row + window)
    rand = jax.random.uniform(key, (n_dst, n_src)) < p_edge
    adj = (band & rand).astype(jnp.float32)
    idx = jnp.arange(n_dst)
    adj = adj.at[idx, idx].set(1.0)          # guarantee >= 1 in-edge per dst node
    deg = adj.sum(axis=1, keepdims=True)
    return adj / deg


def init_params(key, in_feats, n_hidden, n_classes, n_layers):
    dims = [in_feats] + [n_hidden] * (n_layers - 1) + [n_classes]
    params = []
    for i in range(n_layers):
        k1, k2, k3, key = jax.random.split(key, 4)
        f_in, f_out = dims[i], dims[i + 1]
        params.append({
            "w_self": jax.random.normal(k1, (f_in, f_out), jnp.float32) * 0.1,
            "w_neigh": jax.random.normal(k2, (f_in, f_out), jnp.float32) * 0.1,
            "bias": jax.random.normal(k3, (1, f_out), jnp.float32) * 0.01,
        })
    return params


def reference_forward(blocks, x, params):
    """Plain-JAX reference with the same bf16 operand quantization as the kernel
    (including the re-quantization of the f32 neighbor-mean before @ W_neigh)."""
    def q(a):
        return a.astype(jnp.bfloat16).astype(jnp.float32)
    h = x
    n_layers = len(params)
    for i, (blk, p) in enumerate(zip(blocks, params)):
        a = q(blk)
        hh = q(h)
        h_dst = hh[:blk.shape[0]]
        h_neigh = q(a @ hh)
        out = h_dst @ q(p["w_self"]) + h_neigh @ q(p["w_neigh"]) + p["bias"]
        if i != n_layers - 1:
            out = jnp.maximum(out, 0.0)
        h = out
    return h


if __name__ == "__main__":
    key = jax.random.PRNGKey(0)

    # Small synthetic configuration: non-degenerate grids (2 dst tiles per layer,
    # multiple K tiles with varied per-tile nonzero counts on the first layer).
    in_feats, n_hidden, n_classes, n_layers = 64, 64, 16, 3
    node_counts = [384, 256, 128, 64]      # src/dst frontier sizes per sampled block

    k_feat, k_param, k_blk = jax.random.split(key, 3)

    # Input features for the outermost (largest) frontier of nodes.
    x = jax.random.normal(k_feat, (node_counts[0], in_feats), jnp.float32)

    # One dense normalized-adjacency "block" per layer.
    blk_keys = jax.random.split(k_blk, n_layers)
    blocks = [make_block(blk_keys[i], node_counts[i + 1], node_counts[i])
              for i in range(n_layers)]

    params = init_params(k_param, in_feats, n_hidden, n_classes, n_layers)

    out = dist_sage_forward(blocks, x, params)
    out = jax.block_until_ready(out)

    ref = reference_forward(blocks, x, params)
    assert out.shape == (node_counts[-1], n_classes)
    max_err = float(jnp.abs(out - ref).max())
    assert jnp.allclose(out, ref, atol=2e-2, rtol=2e-2), f"max abs err {max_err}"

    print("KERNEL_OK")
</pallas_src>

<mosaic_0001>
module attributes {stable_mosaic.version = 11 : i64} {
  func.func @_sage_conv_kernel(%arg0: i32, %arg1: i32, %arg2: memref<4xi32, #tpu.memory_space<smem>>, %arg3: memref<2xi32, #tpu.memory_space<smem>>, %arg4: memref<128x256xbf16, #tpu.memory_space<vmem>>, %arg5: memref<256x128xbf16, #tpu.memory_space<vmem>>, %arg6: memref<128x128xbf16, #tpu.memory_space<vmem>>, %arg7: memref<128x128xbf16, #tpu.memory_space<vmem>>, %arg8: memref<128x128xbf16, #tpu.memory_space<vmem>>, %arg9: memref<1x128xf32, #tpu.memory_space<vmem>>, %arg10: memref<128x128xbf16, #tpu.memory_space<vmem>>, %arg11: memref<128x128xf32, #tpu.memory_space<vmem>>, %arg12: memref<128x128xf32, #tpu.memory_space<vmem>>) attributes {dimension_semantics = [#tpu.dimension_semantics<parallel>, #tpu.dimension_semantics<arbitrary>], iteration_bounds = array<i64: 2, 2>, scalar_prefetch = 2 : i64, scratch_operands = 2 : i64, tpu.core_type = #tpu.core_type<tc>, window_params = [{transform_indices = @transform_0, window_bounds = array<i64: 128, 256>}, {transform_indices = @transform_1, window_bounds = array<i64: 256, 128>}, {transform_indices = @transform_2, window_bounds = array<i64: 128, 128>}, {pipeline_mode = #tpu.pipeline_mode<synchronous>, transform_indices = @transform_3, window_bounds = array<i64: 128, 128>}, {pipeline_mode = #tpu.pipeline_mode<synchronous>, transform_indices = @transform_4, window_bounds = array<i64: 128, 128>}, {pipeline_mode = #tpu.pipeline_mode<synchronous>, transform_indices = @transform_5, window_bounds = array<i64: 1, 128>}, {transform_indices = @transform_6, window_bounds = array<i64: 128, 128>}]} {
    %c0_i32 = arith.constant 0 : i32
    %0 = arith.cmpi eq, %arg1, %c0_i32 : i32
    %1 = arith.extui %0 : i1 to i32
    %c0_i32_0 = arith.constant 0 : i32
    %2 = arith.cmpi ne, %1, %c0_i32_0 : i32
    scf.if %2 {
      %cst = arith.constant 0.000000e+00 : f32
      %11 = vector.broadcast %cst : f32 to vector<128x128xf32>
      %c0 = arith.constant 0 : index
      %c0_3 = arith.constant 0 : index
      %12 = vector.load %arg11[%c0, %c0_3] : memref<128x128xf32, #tpu.memory_space<vmem>>, vector<128x128xf32>
      tpu.vector_store %arg11[%c0, %c0_3], %11 {strides = array<i32>} : memref<128x128xf32, #tpu.memory_space<vmem>>, vector<128x128xf32>,
      %c0_4 = arith.constant 0 : index
      %c0_5 = arith.constant 0 : index
      %13 = vector.load %arg6[%c0_4, %c0_5] : memref<128x128xbf16, #tpu.memory_space<vmem>>, vector<128x128xbf16>
      %c0_6 = arith.constant 0 : index
      %c0_7 = arith.constant 0 : index
      %14 = vector.load %arg7[%c0_6, %c0_7] : memref<128x128xbf16, #tpu.memory_space<vmem>>, vector<128x128xbf16>
      %cst_8 = arith.constant dense<0.000000e+00> : vector<128x128xf32>
      %15 = tpu.matmul %13, %14, %cst_8 {dimension_numbers = #tpu.dot_dimension_numbers<[1], [0], [0], [1], [0, 0, 1, 1], [], []>} : vector<128x128xbf16>, vector<128x128xbf16>, vector<128x128xf32> -> vector<128x128xf32>
      %c0_9 = arith.constant 0 : index
      %c0_10 = arith.constant 0 : index
      %16 = vector.load %arg9[%c0_9, %c0_10] : memref<1x128xf32, #tpu.memory_space<vmem>>, vector<1x128xf32>
      %17 = vector.broadcast %16 : vector<1x128xf32> to vector<128x128xf32>
      %18 = arith.addf %15, %17 : vector<128x128xf32>
      %c0_11 = arith.constant 0 : index
      %c0_12 = arith.constant 0 : index
      %19 = vector.load %arg12[%c0_11, %c0_12] : memref<128x128xf32, #tpu.memory_space<vmem>>, vector<128x128xf32>
      tpu.vector_store %arg12[%c0_11, %c0_12], %18 {strides = array<i32>} : memref<128x128xf32, #tpu.memory_space<vmem>>, vector<128x128xf32>,
    } else {
    }
    %3 = arith.index_cast %arg0 : i32 to index
    %4 = memref.load %arg3[%3] : memref<2xi32, #tpu.memory_space<smem>>
    %5 = arith.cmpi slt, %arg1, %4 : i32
    %6 = arith.extui %5 : i1 to i32
    %c0_i32_1 = arith.constant 0 : i32
    %7 = arith.cmpi ne, %6, %c0_i32_1 : i32
    scf.if %7 {
      %c0 = arith.constant 0 : index
      %c0_3 = arith.constant 0 : index
      %11 = vector.load %arg11[%c0, %c0_3] : memref<128x128xf32, #tpu.memory_space<vmem>>, vector<128x128xf32>
      %c0_4 = arith.constant 0 : index
      %c0_5 = arith.constant 0 : index
      %12 = vector.load %arg4[%c0_4, %c0_5] : memref<128x256xbf16, #tpu.memory_space<vmem>>, vector<128x256xbf16>
      %c0_6 = arith.constant 0 : index
      %c0_7 = arith.constant 0 : index
      %13 = vector.load %arg5[%c0_6, %c0_7] : memref<256x128xbf16, #tpu.memory_space<vmem>>, vector<256x128xbf16>
      %cst = arith.constant dense<0.000000e+00> : vector<128x128xf32>
      %14 = tpu.matmul %12, %13, %cst {dimension_numbers = #tpu.dot_dimension_numbers<[1], [0], [0], [1], [0, 0, 1, 1], [], []>} : vector<128x256xbf16>, vector<256x128xbf16>, vector<128x128xf32> -> vector<128x128xf32>
      %15 = arith.addf %11, %14 : vector<128x128xf32>
      %c0_8 = arith.constant 0 : index
      %c0_9 = arith.constant 0 : index
      %16 = vector.load %arg11[%c0_8, %c0_9] : memref<128x128xf32, #tpu.memory_space<vmem>>, vector<128x128xf32>
      tpu.vector_store %arg11[%c0_8, %c0_9], %15 {strides = array<i32>} : memref<128x128xf32, #tpu.memory_space<vmem>>, vector<128x128xf32>,
    } else {
    }
    %c1_i32 = arith.constant 1 : i32
    %8 = arith.cmpi eq, %arg1, %c1_i32 : i32
    %9 = arith.extui %8 : i1 to i32
    %c0_i32_2 = arith.constant 0 : i32
    %10 = arith.cmpi ne, %9, %c0_i32_2 : i32
    scf.if %10 {
      %c0 = arith.constant 0 : index
      %c0_3 = arith.constant 0 : index
      %11 = vector.load %arg12[%c0, %c0_3] : memref<128x128xf32, #tpu.memory_space<vmem>>, vector<128x128xf32>
      %c0_4 = arith.constant 0 : index
      %c0_5 = arith.constant 0 : index
      %12 = vector.load %arg11[%c0_4, %c0_5] : memref<128x128xf32, #tpu.memory_space<vmem>>, vector<128x128xf32>
      %13 = arith.truncf %12 : vector<128x128xf32> to vector<128x128xbf16>
      %c0_6 = arith.constant 0 : index
      %c0_7 = arith.constant 0 : index
      %14 = vector.load %arg8[%c0_6, %c0_7] : memref<128x128xbf16, #tpu.memory_space<vmem>>, vector<128x128xbf16>
      %cst = arith.constant dense<0.000000e+00> : vector<128x128xf32>
      %15 = tpu.matmul %13, %14, %cst {dimension_numbers = #tpu.dot_dimension_numbers<[1], [0], [0], [1], [0, 0, 1, 1], [], []>} : vector<128x128xbf16>, vector<128x128xbf16>, vector<128x128xf32> -> vector<128x128xf32>
      %16 = arith.addf %11, %15 : vector<128x128xf32>
      %cst_8 = arith.constant 0.000000e+00 : f32
      %17 = vector.broadcast %cst_8 : f32 to vector<128x128xf32>
      %18 = arith.maximumf %16, %17 : vector<128x128xf32>
      %19 = arith.truncf %18 : vector<128x128xf32> to vector<128x128xbf16>
      %c0_9 = arith.constant 0 : index
      %c0_10 = arith.constant 0 : index
      %20 = vector.load %arg10[%c0_9, %c0_10] : memref<128x128xbf16, #tpu.memory_space<vmem>>, vector<128x128xbf16>
      tpu.vector_store %arg10[%c0_9, %c0_10], %19 {strides = array<i32>} : memref<128x128xbf16, #tpu.memory_space<vmem>>, vector<128x128xbf16>,
    } else {
    }
    return
  }
  func.func @transform_0(%arg0: i32, %arg1: i32, %arg2: memref<4xi32, #tpu.memory_space<smem>>, %arg3: memref<2xi32, #tpu.memory_space<smem>>) -> (i32, i32) {
    %c2_i32 = arith.constant 2 : i32
    %0 = arith.muli %arg0, %c2_i32 : i32
    %1 = arith.addi %0, %arg1 : i32
    %2 = arith.index_cast %1 : i32 to index
    %3 = memref.load %arg2[%2] : memref<4xi32, #tpu.memory_space<smem>>
    %c0_i32 = arith.constant 0 : i32
    return %arg0, %3 : i32, i32
  }
  func.func @transform_1(%arg0: i32, %arg1: i32, %arg2: memref<4xi32, #tpu.memory_space<smem>>, %arg3: memref<2xi32, #tpu.memory_space<smem>>) -> (i32, i32) {
    %c2_i32 = arith.constant 2 : i32
    %0 = arith.muli %arg0, %c2_i32 : i32
    %1 = arith.addi %0, %arg1 : i32
    %2 = arith.index_cast %1 : i32 to index
    %3 = memref.load %arg2[%2] : memref<4xi32, #tpu.memory_space<smem>>
    %c0_i32 = arith.constant 0 : i32
    %c0_i32_0 = arith.constant 0 : i32
    return %3, %c0_i32 : i32, i32
  }
  func.func @transform_2(%arg0: i32, %arg1: i32, %arg2: memref<4xi32, #tpu.memory_space<smem>>, %arg3: memref<2xi32, #tpu.memory_space<smem>>) -> (i32, i32) {
    %c0_i32 = arith.constant 0 : i32
    %c0_i32_0 = arith.constant 0 : i32
    return %arg0, %c0_i32 : i32, i32
  }
  func.func @transform_3(%arg0: i32, %arg1: i32, %arg2: memref<4xi32, #tpu.memory_space<smem>>, %arg3: memref<2xi32, #tpu.memory_space<smem>>) -> (i32, i32) {
    %c0_i32 = arith.constant 0 : i32
    %c0_i32_0 = arith.constant 0 : i32
    %c0_i32_1 = arith.constant 0 : i32
    return %c0_i32, %c0_i32_0 : i32, i32
  }
  func.func @transform_4(%arg0: i32, %arg1: i32, %arg2: memref<4xi32, #tpu.memory_space<smem>>, %arg3: memref<2xi32, #tpu.memory_space<smem>>) -> (i32, i32) {
    %c0_i32 = arith.constant 0 : i32
    %c0_i32_0 = arith.constant 0 : i32
    %c0_i32_1 = arith.constant 0 : i32
    return %c0_i32, %c0_i32_0 : i32, i32
  }
  func.func @transform_5(%arg0: i32, %arg1: i32, %arg2: memref<4xi32, #tpu.memory_space<smem>>, %arg3: memref<2xi32, #tpu.memory_space<smem>>) -> (i32, i32) {
    %c0_i32 = arith.constant 0 : i32
    %c0_i32_0 = arith.constant 0 : i32
    %c0_i32_1 = arith.constant 0 : i32
    return %c0_i32, %c0_i32_0 : i32, i32
  }
  func.func @transform_6(%arg0: i32, %arg1: i32, %arg2: memref<4xi32, #tpu.memory_space<smem>>, %arg3: memref<2xi32, #tpu.memory_space<smem>>) -> (i32, i32) {
    %c0_i32 = arith.constant 0 : i32
    %c0_i32_0 = arith.constant 0 : i32
    return %arg0, %c0_i32 : i32, i32
  }
}

</mosaic_0001>

<bundles_post_ra>
// kernel: tpu_custom_call.1
= control target key start
LH: loop header
LB: loop body
LE: loop exit
PB: predicated region body
PF: predicated region fallthrough
CT: control target
= control target key end

     0   :  { %s2496_s27 = smov [#allocation5]   ;;  %s3074_s0 = inlined_call_operand.hbm [shape: s32[4], index: 0, kind: input, shape index: {}]   ;;  %s3075_s2 = inlined_call_operand.hbm [shape: bf16[256,512], index: 2, kind: input, shape index: {}]   ;;  %s3076_s3 = inlined_call_operand.hbm [shape: bf16[512,128], index: 3, kind: input, shape index: {}]   ;;  %s3077_s4 = inlined_call_operand.hbm [shape: bf16[512,128], index: 4, kind: input, shape index: {}]   ;;  %s3078_s5 = inlined_call_operand.hbm [shape: bf16[128,128], index: 5, kind: input, shape index: {}]   ;;  %s3079_s6 = inlined_call_operand.hbm [shape: bf16[128,128], index: 6, kind: input, shape index: {}]   ;;  %s3080_s7 = inlined_call_operand.vmem [shape: f32[1,128], index: 7, kind: input, shape index: {}]   ;;  %s3081_s8 = inlined_call_operand.hbm [shape: bf16[256,128], index: 8, kind: output, shape index: {}]   ;;  %s3082_s1 = inlined_call_operand.vmem [shape: s32[2], index: 1, kind: input, shape index: {}]  }
   0x1   :  { %3106 = sst [smem:[#allocation39_spill]] %s3075_s2  ;;  %s15_s10 = sshll.u32 %s3082_s1, 4  ;;  %s16_s10 = int_to_ptr.vmem [resolvable:$true] %s15_s10 }
   0x2   :  { %3107 = sst [smem:[#allocation40_spill]] %s3076_s3  ;;  %s2188_s11 = scalar_lea.vmem %s16_s10, 16 }
   0x3   :  { %3108 = sst [smem:[#allocation41_spill]] %s3077_s4  ;;  %p2189_p0 = scmp.ne.s32.totalorder %s16_s10, %s2188_s11 }
   0x4   :  { %3109 = sst [smem:[#allocation42_spill]] %s3078_s5  ;;  %p2193_p1 = scmp.lt.s32.totalorder %s16_s10, %s16_s10 }
   0x5   :  { %3110 = sst [smem:[#allocation43_spill]] %s3079_s6  ;;  %p2194_p2 = scmp.lt.s32.totalorder %s2188_s11, %s2188_s11 }
   0x6   :  { %3111 = sst [smem:[#allocation44_spill]] %s3080_s7 }
   0x7   :  { %3112 = sst [smem:[#allocation45_spill]] %s3081_s8  ;;  %p2195_p3 = por %p2194_p2, %p2193_p1 }
   0x8   :  { %14 = dma.hbm_to_smem %s3074_s0, 16, %s2496_s27, [#allocation4] }
   0x9   :  { %p2196_p4 = pnand %p2195_p3, %p2189_p0 }
   0xb   :  { %2199 = shalt.err (!%p2196_p4)  }
   0xc   :  { %s2497_s12 = smov [#allocation6]  }
   0xd   :  { %18 = dma.vmem_to_smem %s16_s10, 16, %s2497_s12, [#allocation4] }
   0xe   :  { %2418 = dma.done.wait [#allocation4], 32 }
   0xf   :  { %2419 = vsyncadd [#allocation4], 4294967264 }
  0x10   :  { %20 = sfence }
  0x11   :  { %21 = vsyncpa [#allocation8], 0 }
  0x12   :  { %23 = vsyncpa [#allocation8 + $0x1], 0 }
  0x13   :  { %24 = vsyncpa [#allocation11], 0 }
  0x14   :  { %26 = vsyncpa [#allocation11 + $0x1], 0 }
  0x15   :  { %27 = vsyncpa [#allocation14], 0 }
  0x16   :  { %28 = vsyncpa [#allocation9], 0 }
  0x17   :  { %30 = vsyncpa [#allocation9 + $0x1], 0  ;;  %s2563_s0 = smov 0   ;;  %s2565_s1 = smov 0  }
  0x18   :  { %s2567_s13 = smov 0   ;;  %s2569_s14 = smov 0  }
  0x19   :  { %s2571_s15 = smov 0   ;;  %s2573_s16 = smov 0  }
  0x1a   :  { %s2575_s17 = smov 0   ;;  %s2577_s18 = smov 0  }
  0x1b   :  { %s2579_s19 = smov 0   ;;  %s2581_s20 = smov 0  }
  0x1c   :  { %s2583_s21 = smov 0   ;;  %s2585_s22 = smov 0  }
  0x1d   :  { %s2587_s23 = smov 0   ;;  %s2589_s24 = smov 0  }
  0x1e LB: > { %3113 = sst [smem:[#allocation27_spill]] %s2442_s0  ;;  %s2634_s25 = sadd.s32 4294967295, %s2494_s24   ;;  %s2494_s24 = sphi %s2589_s24, %s36_s24   ;;  %s2490_s23 = sphi %s2587_s23, %s3196_s23   ;;  %s2486_s22 = sphi %s2585_s22, %s3185_s22   ;;  %s2482_s21 = sphi %s2583_s21, %s3195_s21   ;;  %s2478_s20 = sphi %s2581_s20, %s3194_s20   ;;  %s2474_s19 = sphi %s2579_s19, %s3193_s19   ;;  %s2470_s18 = sphi %s2577_s18, %s3192_s18   ;;  %s2466_s17 = sphi %s2575_s17, %s3191_s17   ;;  %s2462_s16 = sphi %s2573_s16, %s3190_s16   ;;  %s2458_s15 = sphi %s2571_s15, %s3189_s15   ;;  %s2454_s14 = sphi %s2569_s14, %s3182_s14   ;;  %s2450_s13 = sphi %s2567_s13, %s3188_s13   ;;  %s2446_s1 = sphi %s2565_s1, %s3187_s1   ;;  %s2442_s0 = sphi %s2563_s0, %s3181_s0  }
  0x1f   : > { %3114 = sst [smem:[#allocation28_spill]] %s2446_s1  ;;  %p1561_p5 = scmp.ge.s32.totalorder %s2494_s24, 1 }
  0x20   : > { %3115 = sst [smem:[#allocation29_spill]] %s2458_s15  ;;  %p3097_p6 = scmp.eq.s32.totalorder %s2634_s25, 0 }
  0x21   : > { %3116 = sst [smem:[#allocation30_spill]] %s2478_s20  ;;  %p234_p8 = scmp.lt.s32.totalorder %s2494_s24, 5 }
  0x22   : > { %3117 = sst [smem:[#allocation31_spill]] %s2482_s21  ;;  %s2498_s27 = smov [#allocation13]  }
  0x23   : > { %3118 = sst [smem:[#allocation32_spill]] %s2486_s22  ;;  %p2640_p9 = pnand %p1561_p5, %p234_p8 }
  0x24   : > { %s246_s28 = sshll.u32 %s2498_s27, 4  ;;  %s247_s28 = int_to_ptr.vmem [resolvable:$true] %s246_s28 }
  0x25   : > { %s3119_s26 = scalar_select %p2640_p9, 1, 0 }
  0x26   : > { %p1961_p10 = pneg %p2640_p9  ;;  %s2211_s30 = scalar_lea.vmem %s247_s28, 1024 }
  0x27   : > { %3120 = sst [smem:[#allocation33_spill]] %s3119_s26  ;;  %p2212_p13 = scmp.ne.s32.totalorder %s247_s28, %s2211_s30 }
  0x28   : > { %p2648_p11 = pnand %p1961_p10, %p3097_p6  ;;  %p2219_p2 = scmp.lt.s32.totalorder %s247_s28, %s247_s28 }
  0x29   : > { %p2220_p3 = scmp.lt.s32.totalorder %s2211_s30, %s2211_s30 }
  0x2a   : > { %p2202_p12 = pneg %p2648_p11 }
  0x2b   : > { %p2221_p4 = por %p2220_p3, %p2219_p2 }
  0x2c   : > { %p2214_p0 = pnand %p2212_p13, %p2202_p12 }
  0x2e   : > { %p2215_p1 = pneg %p2214_p0 }
  0x30   : > { %p2222_p5 = pnand %p2221_p4, %p2215_p1 }
  0x32   : > { %2225 = shalt.err (!%p2222_p5)
}
  0x33   : > { %s3084_s9 = smov 64   ;;  %s3086_s10 = smov 4  }
  0x34   : > { %s3122_s5 = sld [smem:[#allocation42_spill]]  ;;  %s45_s27 = sadd.s32 1, %s2486_s22 }
  0x35   : > { %s48_s30 = sadd.s32 1, %s2490_s23  ;;  %p46_p8 = scmp.ge.s32.totalorder %s45_s27, 2 }
  0x36   : > { %s1557_s8 = sshll.u32 %s2490_s23, 1  ;;  %p3098_p10 = scmp.eq.s32.totalorder %s2494_s24, 0 }
  0x37   : > { %s2669_s21 = sadd.s32 %s2486_s22, %s1557_s8  ;;  %s3198_s27 = smov (%p46_p8, %s45_s27), 0 }
  0x38   : > { %3123 = sst [smem:[#allocation34_spill]] %s3198_s27  ;;  %s3200_s30 = smov (!%p46_p8, %s48_s30), %s2490_s23 }
  0x39   : > { %s2676_s11 = sld [smem:[#allocation5 + %s2669_s21]]  ;;  %p50_p13 = scmp.ge.s32.totalorder %s3200_s30, 2 }
  0x3a   : > { %1964 = dma.hbm_to_vmem [thread:$0]  (!%p2648_p11), %s3122_s5, 1024, %s247_s28, [#allocation14], %s3084_s9, %s3084_s9, %s3086_s10  }
  0x3b   : > { %s95_s28 = sadd.s32 1, %s2462_s16  ;;  %s88_s12 = sld [smem:[#allocation5 + %s2669_s21]] }
  0x3c   : > { %p102_p0 = scmp.ne.s32.totalorder %s2462_s16, %s2458_s15  ;;  %p108_p1 = scmp.ne.s32.totalorder %s2458_s15, %s2454_s14 }
  0x3d   : > { %s3202_s30 = smov (%p50_p13, %s3200_s30), 0  ;;  %p3099_p4 = scmp.lt.s32.totalorder %s2494_s24, 4 }
  0x3e   : > { %3124 = sst [smem:[#allocation35_spill]] %s3202_s30  ;;  %p2688_p2 = por %p102_p0, %p3098_p10 }
  0x3f   : > { %p2694_p3 = por %p108_p1, %p3097_p6  ;;  %s1558_s10 = sshll.u32 %s3202_s30, 1 }
  0x40   : > { %s56_s14 = sadd.s32 %s1558_s10, %s3198_s27  ;;  %s305_s20 = sand.u32 1, %s2462_s16  }
  0x41   : > { %s3126_s9 = scalar_select %p2694_p3, 1, 0 }
  0x42   : > { %s2702_s22 = sld [smem:[#allocation5 + %s56_s14]]  ;;  %s1571_s15 = sshll.u32 %s305_s20, 7 }
  0x43   : > { %3127 = sst [smem:[#allocation36_spill]] %s3126_s9  ;;  %p2709_p5 = pnand %p3099_p4, %p2688_p2 }
  0x44   : > { %s91_s7 = sld [smem:[#allocation5 + %s56_s14]]  ;;  %s307_s5 = scalar_lea.vmem [#allocation10], %s1571_s15 }
  0x45   : > { %s1948_s4 = scalar_select %p2688_p2, [#allocation5], [#allocation18] }
  0x46   : > { %s1949_s9 = scalar_select %p2688_p2, %s2669_s21, 0 }
  0x47   : > { %s3204_s4 = smov (!%p3099_p4, %s1948_s4), [#allocation20]  ;;  %s317_s27 = sshll.u32 %s307_s5, 4  ;;  %s2720_s27 = int_to_ptr.vmem [resolvable:$true] %s317_s27 }
  0x48   : > { %s3206_s9 = smov (!%p3099_p4, %s1949_s9), 0  ;;  %s2501_s0 = smov [#allocation15]  }
  0x49   : > { %s310_s14 = sld [smem:[%s3204_s4 + %s3206_s9]]  ;;  %s259_s2 = sshll.u32 %s2501_s0, 4  ;;  %s260_s2 = int_to_ptr.vmem [resolvable:$true] %s259_s2 }
  0x4a   : > { %s92_s10 = ssub.s32 %s88_s12, %s91_s7  ;;  %s2237_s1 = scalar_lea.vmem %s260_s2, 1024 }
  0x4b   : > { %p93_p8 = scmp.eq.s32.totalorder %s92_s10, 0  ;;  %p2238_p13 = scmp.ne.s32.totalorder %s260_s2, %s2237_s1 }
  0x4c   : > { %p2245_p2 = scmp.lt.s32.totalorder %s260_s2, %s260_s2  ;;  %p2246_p7 = scmp.lt.s32.totalorder %s2237_s1, %s2237_s1 }
  0x4d   : > { %s2725_s20 = scalar_select %p93_p8, %s2462_s16, %s95_s28  }
  0x4e   : > { %p2240_p0 = pnand %p2238_p13, %p2202_p12  ;;  %p2247_p6 = por %p2246_p7, %p2245_p2 }
  0x50   : > { %p2241_p1 = pneg %p2240_p0 }
  0x52   : > { %p2248_p10 = pnand %p2247_p6, %p2241_p1 }
  0x54   : > { %2251 = shalt.err (!%p2248_p10)
}
  0x55   : > { %s3129_s5 = smov 4   ;;  %s3130_s7 = smov 64  }
  0x56   : > { %s3131_s6 = sld [smem:[#allocation43_spill]]  ;;  %s1667_s0 = sshll.u32 %s310_s14, 11 }
  0x57   : > { %s2740_s1 = ssub.s32 %s2490_s23, %s3202_s30  ;;  %s3132_s3 = sld [smem:[#allocation40_spill]] }
  0x58   : > { %s3133_s8 = sand.u32 1, %s2494_s24   ;;  %p2254_p7 = pneg %p2709_p5 }
  0x59   : > { %s2751_s10 = scalar_lea.sflag [#allocation11], %s3133_s8 }
  0x5c   : > { %1967 = dma.hbm_to_vmem [thread:$0]  (!%p2648_p11), %s3131_s6, 1024, %s260_s2, [#allocation14], %s3130_s7, %s3130_s7, %s3129_s5  }
  0x5d   : > { %s2745_s29 = scalar_lea.hbm %s3132_s3, %s1667_s0  ;;  %s2257_s15 = scalar_lea.hbm %s3132_s3, 4096 }
  0x5e   : > { %s2252_s4 = scalar_lea.hbm %s2745_s29, 2048  ;;  %p2258_p10 = scmp.lt.s32.totalorder %s2745_s29, %s3132_s3 }
  0x5f   : > { %p2253_p6 = scmp.ne.s32.totalorder %s2745_s29, %s2252_s4  ;;  %p2259_p8 = scmp.lt.s32.totalorder %s2257_s15, %s2252_s4 }
  0x61   : > { %p2255_p11 = pnand %p2254_p7, %p2253_p6  ;;  %p2260_p13 = por %p2259_p8, %p2258_p10 }
  0x63   : > { %p2256_p12 = pneg %p2255_p11 }
  0x65   : > { %p2261_p0 = pnand %p2260_p13, %p2256_p12 }
  0x67   : > { %2264 = shalt.err (!%p2261_p0)
}
  0x68   : > { %s2265_s28 = scalar_lea.vmem %s2720_s27, 2048  ;;  %s2502_s8 = smov [#allocation10]  }
  0x69   : > { %p2266_p1 = scmp.ne.s32.totalorder %s2720_s27, %s2265_s28  ;;  %s2270_s12 = sshll.u32 %s2502_s8, 4  ;;  %s2271_s12 = int_to_ptr.vmem [resolvable:$false] %s2270_s12 }
  0x6a   : > { %s2272_s2 = scalar_lea.vmem %s2271_s12, 4096  ;;  %p2273_p11 = scmp.lt.s32.totalorder %s2720_s27, %s2271_s12 }
  0x6b   : > { %p2268_p2 = pnand %p2266_p1, %p2254_p7  ;;  %p2274_p4 = scmp.lt.s32.totalorder %s2272_s2, %s2265_s28 }
  0x6d   : > { %p2269_p6 = pneg %p2268_p2  ;;  %p2275_p3 = por %p2274_p4, %p2273_p11 }
  0x6f   : > { %p2276_p9 = pnand %p2275_p3, %p2269_p6 }
  0x71   : > { %2279 = shalt.err (!%p2276_p9)
}
  0x72   : > { %1978 = dma.hbm_to_vmem [thread:$0]  (!%p2709_p5), %s2745_s29, 2048, %s2720_s27, %s2751_s10, %s3130_s7, %s3130_s7, %s3129_s5  }
  0x73   : > { %s3134_s26 = ssub.s32 %s2676_s11, %s2702_s22  ;;  %s63_s4 = sadd.s32 1, %s2474_s19 }
  0x74   : > { %s60_s12 = sor.u32 %s3134_s26, %s2740_s1  ;;  %p70_p3 = scmp.ne.s32.totalorder %s2474_s19, %s2470_s18 }
  0x75   : > { %p61_p9 = scmp.eq.s32.totalorder %s60_s12, 0  ;;  %p76_p4 = scmp.ne.s32.totalorder %s2470_s18, %s2466_s17 }
  0x76   : > { %s276_s14 = sand.u32 1, %s2474_s19   ;;  %p3136_p7 = scmp.eq.s32.totalorder %s2494_s24, 0 }
  0x77   : > { %s2786_s15 = scalar_select %p61_p9, %s2474_s19, %s63_s4  }
  0x78   : > { %p72_p12 = por %p3136_p7, %p70_p3  ;;  %p3137_p10 = scmp.eq.s32.totalorder %s2634_s25, 0 }
  0x79   : > { %3135 = sst [smem:[#allocation37_spill]] %s2786_s15  ;;  %s1565_s27 = sshll.u32 %s276_s14, 7 }
  0x7a   : > { %p2792_p8 = por %p3137_p10, %p76_p4  ;;  %s1666_s22 = sshll.u32 %s2490_s23, 6 }
  0x7b   : > { %s1945_s11 = scalar_select %p72_p12, [#allocation5], [#allocation17] }
  0x7c   : > { %s3138_s9 = scalar_select %p2792_p8, 1, 0 }
  0x7d   : > { %s3140_s29 = sld [smem:[#allocation28_spill]]  ;;  %s3208_s21 = smov (!%p72_p12, %s2669_s21), 0 }
  0x7e   : > { %3139 = sst [smem:[#allocation38_spill]] %s3138_s9  ;;  %p3141_p5 = scmp.lt.s32.totalorder %s2494_s24, 4 }
  0x7f   : > { %s280_s17 = scalar_lea.vmem [#allocation7], %s1565_s27  ;;  %s1556_s26 = sadd.s32 4294967294, %s2494_s24  }
  0x80   : > { %s3210_s11 = smov (!%p3141_p5, %s1945_s11), [#allocation19]  ;;  %p3142_p13 = pmov %p3141_p5 }
  0x81   : > { %s293_s0 = sshll.u32 %s280_s17, 4  ;;  %p3143_p0 = pmov %p3141_p5  ;;  %s2808_s0 = int_to_ptr.vmem [resolvable:$true] %s293_s0 }
  0x82   : > { %s3212_s21 = smov (!%p3142_p13, %s3208_s21), 0  ;;  %s121_s3 = sadd.s32 1, %s2450_s13 }
  0x83   : > { %p2804_p1 = pnand %p3143_p0, %p72_p12  ;;  %s283_s8 = sld [smem:[%s3210_s11 + %s3212_s21]] }
  0x84   : > { %s3145_s15 = sld [smem:[#allocation39_spill]]  ;;  %s2820_s17 = scalar_lea.sflag [#allocation8], %s276_s14 }
  0x85   : > { %p2282_p9 = pneg %p2804_p1 }
  0x89   : > { %s1568_s2 = sshll.u32 %s283_s8, 1 }
  0x8a   : > { %s290_s12 = sadd.s32 %s1666_s22, %s1568_s2  ;;  %s3146_s9 = smov %s3145_s15 }
  0x8b   : > { %s1570_s4 = sshll.u32 %s290_s12, 6  ;;  %s2285_s8 = scalar_lea.hbm %s3146_s9, 8192 }
  0x8c   : > { %s2816_s27 = scalar_lea.hbm %s3145_s15, %s1570_s4 }
  0x8d   : > { %s2280_s21 = scalar_lea.hbm %s2816_s27, 2048  ;;  %p2286_p7 = scmp.lt.s32.totalorder %s2816_s27, %s3146_s9 }
  0x8e   : > { %p2281_p11 = scmp.ne.s32.totalorder %s2816_s27, %s2280_s21  ;;  %p2287_p12 = scmp.lt.s32.totalorder %s2285_s8, %s2280_s21 }
  0x90   : > { %p2283_p3 = pnand %p2282_p9, %p2281_p11  ;;  %p2288_p10 = por %p2287_p12, %p2286_p7 }
  0x92   : > { %p2284_p4 = pneg %p2283_p3 }
  0x94   : > { %p2289_p5 = pnand %p2288_p10, %p2284_p4 }
  0x96   : > { %2292 = shalt.err (!%p2289_p5)
}
  0x97   : > { %s2293_s30 = scalar_lea.vmem %s2808_s0, 2048  ;;  %s2503_s14 = smov [#allocation7]  }
  0x98   : > { %p2294_p13 = scmp.ne.s32.totalorder %s2808_s0, %s2293_s30  ;;  %s2298_s15 = sshll.u32 %s2503_s14, 4  ;;  %s2299_s15 = int_to_ptr.vmem [resolvable:$false] %s2298_s15 }
  0x99   : > { %s2300_s12 = scalar_lea.vmem %s2299_s15, 4096  ;;  %p2301_p3 = scmp.lt.s32.totalorder %s2808_s0, %s2299_s15 }
  0x9a   : > { %p2296_p0 = pnand %p2294_p13, %p2282_p9  ;;  %p2302_p6 = scmp.lt.s32.totalorder %s2300_s12, %s2293_s30 }
  0x9c   : > { %p2297_p11 = pneg %p2296_p0  ;;  %p2303_p2 = por %p2302_p6, %p2301_p3 }
  0x9e   : > { %p2304_p8 = pnand %p2303_p2, %p2297_p11 }
  0xa0   : > { %2307 = shalt.err (!%p2304_p8)
}
  0xa1   : > { %s2504_s4 = smov 256   ;;  %s3147_s21 = sld [smem:[#allocation27_spill]] }
  0xa2   : > { %s2505_s22 = smov 128   ;;  %s2506_s11 = smov 8  }
  0xa3   : > { %1973 = dma.hbm_to_vmem [thread:$0]  (!%p2804_p1), %s2816_s27, 2048, %s2808_s0, %s2820_s17, %s2504_s4, %s2505_s22, %s2506_s11  }
  0xa4   : > { %p3148_p8 = scmp.eq.s32.totalorder %s2740_s1, 0  ;;  %p3149_p2 = scmp.eq.s32.totalorder %s2494_s24, 0 }
  0xa5   : > { %p3150_p6 = scmp.ne.s32.totalorder %s2450_s13, %s3140_s29  ;;  %p3153_p12 = scmp.eq.s32.totalorder %s2634_s25, 3 }
  0xa6   : > { %s2846_s8 = scalar_select %p3148_p8, %s2450_s13, %s121_s3  }
  0xa7   : > { %p2853_p9 = por %p3150_p6, %p3149_p2  ;;  %p134_p4 = scmp.ne.s32.totalorder %s3140_s29, %s3147_s21 }
  0xa8   : > { %p3152_p7 = pmov %p3150_p6  ;;  %p227_p1 = scmp.eq.s32.totalorder %s1556_s26, 3 }
  0xa9   : > { %p3155_p5 = scmp.eq.s32.totalorder %s2634_s25, 0  ;;  %s329_s1 = sand.u32 1, %s2450_s13  }
  0xaa   : > { %p2864_p10 = por %p3153_p12, %p3152_p7  ;;  %p2877_p0 = por %p227_p1, %p134_p4 }
  0xab   : > { %p2872_p13 = por %p134_p4, %p3155_p5  ;;  %s1575_s28 = sshll.u32 %s329_s1, 6 }
  0xac   : > { %s1668_s27 = sshll.u32 %s2490_s23, 10  ;;  %s3158_s30 = sld [smem:[#allocation41_spill]] }
  0xad   : > { %s331_s15 = scalar_lea.vmem [#allocation12], %s1575_s28  ;;  %p3159_p11 = scmp.lt.s32.totalorder %s2494_s24, 4 }
  0xae   : > { %s338_s12 = sshll.u32 %s331_s15, 4  ;;  %s2507_s21 = smov [#allocation12]   ;;  %s339_s12 = int_to_ptr.vmem [resolvable:$true] %s338_s12 }
  0xaf   : > { %p2889_p3 = pnand %p3159_p11, %p2853_p9  ;;  %s2321_s4 = scalar_lea.vmem %s339_s12, 1024 }
  0xb0   : > { %p2322_p2 = scmp.ne.s32.totalorder %s339_s12, %s2321_s4  ;;  %s2326_s22 = sshll.u32 %s2507_s21, 4  ;;  %s2327_s22 = int_to_ptr.vmem [resolvable:$false] %s2326_s22 }
  0xb1   : > { %p2310_p8 = pneg %p2889_p3  ;;  %s2328_s11 = scalar_lea.vmem %s2327_s22, 2048 }
  0xb2   : > { %s337_s14 = scalar_lea.hbm %s3158_s30, %s1668_s27  ;;  %p2329_p7 = scmp.lt.s32.totalorder %s339_s12, %s2327_s22 }
  0xb3   : > { %p2324_p6 = pnand %p2322_p2, %p2310_p8  ;;  %p2330_p12 = scmp.lt.s32.totalorder %s2328_s11, %s2321_s4 }
  0xb5   : > { %p2325_p4 = pneg %p2324_p6  ;;  %p2331_p1 = por %p2330_p12, %p2329_p7 }
  0xb7   : > { %p2332_p5 = pnand %p2331_p1, %p2325_p4 }
  0xb9   : > { %2335 = shalt.err (!%p2332_p5)
}
  0xba   : > { %1981 = dma.hbm_to_vmem [thread:$0]  (!%p2889_p3), %s337_s14, 1024, %s339_s12, %s2751_s10, %s3130_s7, %s3130_s7, %s3129_s5  }
  0xbb   : > { %s3161_s2 = sld [smem:[#allocation33_spill]] }
  0xc1   : > { %p3162_p9 = scmp.ne.s32.totalorder %s3161_s2, 0 }
  0xc2   : > { %s3163_s1 = sld [smem:[#allocation38_spill]] (!%p3162_p9)  ;;  %s352_s28 = sand.u32 (!%p3162_p9), 1, %s2470_s18  }
  0xc3   : > { %350 = sbr.rel (%p3162_p9) target bundleno = 1047 (0x417), region = 44  ;;  %s1579_s27 = sshll.u32 (!%p3162_p9), %s352_s28, 7 }
  0xc4   : > { %s353_s29 = scalar_lea.sflag (!%p3162_p9), [#allocation8], %s352_s28  ;;  %s2904_s17 = scalar_lea.vmem (!%p3162_p9), [#allocation7], %s1579_s27 }
  0xc8   : > { %p3164_p11 = scmp.ne.s32.totalorder %s3163_s1, 0 }
  0xca   : > { %2421 = dma.done.wait (%p3164_p11), %s353_s29, 2048  }
  0xcb   : > { %2423 = vsyncadd (%p3164_p11), %s353_s29, 4294965248  ;;  %s3165_s30 = sld [smem:[#allocation29_spill]]  ;;  %s361_s26 = sand.u32 1, %s2634_s25  }
  0xcc   : > { %s3166_s15 = sld [smem:[#allocation36_spill]]  ;;  %s362_s10 = scalar_lea.sflag [#allocation11], %s361_s26 }
  0xd1   : > { %s363_s5 = sand.u32 1, %s3165_s30  }
  0xd2   : > { %s1580_s7 = sshll.u32 %s363_s5, 7  ;;  %p3167_p3 = scmp.ne.s32.totalorder %s3166_s15, 0 }
  0xd3   : > { %s2912_s14 = scalar_lea.vmem [#allocation10], %s1580_s7 }
  0xd4   : > { %2425 = dma.done.wait (%p3167_p3), %s362_s10, 2048  }
  0xd5   : > { %2427 = vsyncadd (%p3167_p3), %s362_s10, 4294965248  ;;  %s3168_s12 = sld [smem:[#allocation28_spill]] }
  0xdb   : > { %s372_s4 = sand.u32 1, %s3168_s12  }
  0xdc   : > { %s1581_s21 = sshll.u32 %s372_s4, 6 }
  0xdd   : > { %s2921_s22 = scalar_lea.vmem [#allocation12], %s1581_s21 }
  0xde   : > { %2429 = dma.done.wait (%p2872_p13), %s362_s10, 1024  }
  0xdf   : > { %2431 = vsyncadd (%p2872_p13), %s362_s10, 4294966272  ;;  %p3169_p8 = scmp.eq.s32.totalorder %s2634_s25, 0 }
  0xe1   : > { %2433 = dma.done.wait (%p3169_p8), [#allocation14], 2048   ;;  %p3170_p2 = pmov %p3169_p8 }
  0xe2   : > { %s2931_s11 = scalar_lea.vmem [#allocation16], %s1581_s21  ;;  %s3171_s2 = sld [smem:[#allocation30_spill]] }
  0xe3   : > { %2435 = vsyncadd (%p3170_p2), [#allocation14], 4294965248 }
  0xe8   : > { %p1585_p6 = scmp.ne.s32.totalorder %s3171_s2, 0 }
  0xe9   : > { %s3172_s1 = sld [smem:[#allocation44_spill]] (!%p1585_p6) }
  0xea   : > { %436 = sbr.rel (%p1585_p6) target bundleno = 482 (0x1e2), region = 68 }
  0xef   : > { %v2116_v0 = vld [vmem:[#allocation13 + $0x38] sm:$0xff]   ;;  %v2508_v1 = vmov 0.0   ;;  %v2117_v2 = vld [vmem:[#allocation13 + $0x30] sm:$0xff]   ;;  %v2118_v3 = vld [vmem:[#allocation13 + $0x28] sm:$0xff]  }
  0xf0   : > { %437 = vst [vmem:[#allocation2 + $0x30] sm:$0xff] %v2508_v1  ;;  %438 = vst [vmem:[#allocation2] sm:$0xff] %v2508_v1  ;;  %1829 = vmatprep.subr.bf16.mxu0 %v2116_v0  ;;  %1893 = vmatprep.subr.bf16.mxu1 %v2116_v0  ;;  %v2119_v4 = vld [vmem:[#allocation13 + $0x20] sm:$0xff]   ;;  %v2120_v7 = vld [vmem:[#allocation13 + $0x18] sm:$0xff]  }
  0xf1   : > { %439 = vst [vmem:[#allocation2 + $0x58] sm:$0xff] %v2508_v1  ;;  %440 = vst [vmem:[#allocation2 + $0x18] sm:$0xff] %v2508_v1  ;;  %1830 = vmatpush3.bf16.msra.mxu0 %v2116_v0  ;;  %1901 = vmatpush3.bf16.msra.mxu1 %v2116_v0  ;;  %v2124_v5 = vld [vmem:[%s2921_s22] sm:$0xff]   ;;  %v2121_v8 = vld [vmem:[#allocation13 + $0x10] sm:$0xff]  }
  0xf2   : > { %441 = vst [vmem:[#allocation2 + $0x50] sm:$0xff] %v2508_v1  ;;  %442 = vst [vmem:[#allocation2 + $0x68] sm:$0xff] %v2508_v1  ;;  %1831 = vmatprep.subr.bf16.mxu0 %v2117_v2  ;;  %1894 = vmatprep.subr.bf16.mxu1 %v2117_v2  ;;  %v2125_v6 = vld [vmem:[%s2921_s22 + $0x20] sm:$0xff]   ;;  %v2122_v9 = vld [vmem:[#allocation13 + $0x8] sm:$0xff]  }
  0xf3   : > { %443 = vst [vmem:[#allocation2 + $0x8] sm:$0xff] %v2508_v1  ;;  %444 = vst [vmem:[#allocation2 + $0x48] sm:$0xff] %v2508_v1  ;;  %1845 = vmatprep.mubr.bf16.mxu0 %v2124_v5  ;;  %1853 = vmatprep.mubr.bf16.mxu1 %v2125_v6  ;;  %v2123_v10 = vld [vmem:[#allocation13] sm:$0xff]   ;;  %v2126_v11 = vld [vmem:[%s2921_s22 + $0x8] sm:$0xff]  }
  0xf4   : > { %445 = vst [vmem:[#allocation2 + $0x40] sm:$0xff] %v2508_v1  ;;  %446 = vst [vmem:[#allocation2 + $0x20] sm:$0xff] %v2508_v1  ;;  %v2127_v12 = vld [vmem:[%s2921_s22 + $0x28] sm:$0xff]   ;;  %v2128_v13 = vld [vmem:[%s2921_s22 + $0x10] sm:$0xff]  }
  0xf5   : > { %447 = vst [vmem:[#allocation2 + $0x10] sm:$0xff] %v2508_v1  ;;  %448 = vst [vmem:[#allocation2 + $0x38] sm:$0xff] %v2508_v1  ;;  %1832 = vmatpush3.bf16.msra.mxu0 %v2117_v2  ;;  %1902 = vmatpush3.bf16.msra.mxu1 %v2117_v2  ;;  %v2129_v14 = vld [vmem:[%s2921_s22 + $0x30] sm:$0xff]   ;;  %v2130_v15 = vld [vmem:[%s2921_s22 + $0x18] sm:$0xff]  }
  0xf6   : > { %449 = vst [vmem:[#allocation2 + $0x60] sm:$0xff] %v2508_v1  ;;  %450 = vst [vmem:[#allocation2 + $0x70] sm:$0xff] %v2508_v1  ;;  %1833 = vmatprep.subr.bf16.mxu0 %v2118_v3  ;;  %1895 = vmatprep.subr.bf16.mxu1 %v2118_v3  ;;  %v2131_v16 = vld [vmem:[%s2921_s22 + $0x38] sm:$0xff]   ;;  %v1586_v17 = vld [vmem:[%s3172_s1] ss:$0 sm:$0xff] }
  0xf7   : > { %451 = vst [vmem:[#allocation2 + $0x78] sm:$0xff] %v2508_v1  ;;  %452 = vst [vmem:[#allocation2 + $0x28] sm:$0xff] %v2508_v1 }
  0xf9   : > { %1834 = vmatpush3.bf16.msra.mxu0 %v2118_v3  ;;  %1903 = vmatpush3.bf16.msra.mxu1 %v2118_v3 }
  0xfa   : > { %1835 = vmatprep.subr.bf16.mxu0 %v2119_v4  ;;  %1896 = vmatprep.subr.bf16.mxu1 %v2119_v4 }
  0xfd   : > { %1836 = vmatpush3.bf16.msra.mxu0 %v2119_v4  ;;  %1904 = vmatpush3.bf16.msra.mxu1 %v2119_v4 }
  0xfe   : > { %1837 = vmatprep.subr.bf16.mxu0 %v2120_v7  ;;  %1897 = vmatprep.subr.bf16.mxu1 %v2120_v7 }
 0x101   : > { %1838 = vmatpush3.bf16.msra.mxu0 %v2120_v7  ;;  %1905 = vmatpush3.bf16.msra.mxu1 %v2120_v7 }
 0x102   : > { %1839 = vmatprep.subr.bf16.mxu0 %v2121_v8  ;;  %1898 = vmatprep.subr.bf16.mxu1 %v2121_v8 }
 0x105   : > { %1840 = vmatpush3.bf16.msra.mxu0 %v2121_v8  ;;  %1906 = vmatpush3.bf16.msra.mxu1 %v2121_v8 }
 0x106   : > { %1841 = vmatprep.subr.bf16.mxu0 %v2122_v9  ;;  %1899 = vmatprep.subr.bf16.mxu1 %v2122_v9 }
 0x109   : > { %1842 = vmatpush3.bf16.msra.mxu0 %v2122_v9  ;;  %1907 = vmatpush3.bf16.msra.mxu1 %v2122_v9 }
 0x10a   : > { %1843 = vmatprep.subr.bf16.mxu0 %v2123_v10  ;;  %1900 = vmatprep.subr.bf16.mxu1 %v2123_v10 }
 0x10d   : > { %1844 = vmatpush3.bf16.msra.mxu0 %v2123_v10  ;;  %1908 = vmatpush3.bf16.msra.mxu1 %v2123_v10 }
 0x110   : > { %1846 = vmatmul.mubr.bf16.vlgmr.msra.gmra.mxu0 %v2126_v11  ;;  %1854 = vmatmul.mubr.bf16.vlgmr.msra.gmra.mxu1 %v2127_v12 }
 0x111   : > { %1849 = vmatprep.mubr.bf16.mxu0 %v2128_v13  ;;  %1857 = vmatprep.mubr.bf16.mxu1 %v2129_v14 }
 0x118   : > { %1850 = vmatmul.mubr.bf16.gmra.mxu0 %v2130_v15  ;;  %1858 = vmatmul.mubr.bf16.gmra.mxu1 %v2131_v16 }
 0x1d0   : > { %v1847_v18 = vpop.f32.mrf.mxu0  ;;  %v1855_v19 = vpop.f32.mrf.mxu1 }
 0x1d1   : > { %v631_v20 = vadd.f32 %v1847_v18, %v1586_v17  ;;  %v663_v21 = vadd.f32 %v1855_v19, %v1586_v17 }
 0x1d2   : > { %v622_v22 = vpop.f32.mrf.mxu0  ;;  %v654_v23 = vpop.f32.mrf.mxu1 }
 0x1d3   : > { %687 = vst [vmem:[#allocation3 + $0x10] sm:$0xff] %v631_v20  ;;  %695 = vst [vmem:[#allocation3 + $0x18] sm:$0xff] %v663_v21  ;;  %v623_v24 = vadd.f32 %v1586_v17, %v622_v22  ;;  %v655_v25 = vadd.f32 %v1586_v17, %v654_v23 }
 0x1d4   : > { %v1848_v26 = vpop.f32.mrf.mxu0  ;;  %v1856_v27 = vpop.f32.mrf.mxu1 }
 0x1d5   : > { %685 = vst [vmem:[#allocation3 + $0x28] sm:$0xff] %v623_v24  ;;  %693 = vst [vmem:[#allocation3 + $0x20] sm:$0xff] %v655_v25  ;;  %v634_v28 = vadd.f32 %v1848_v26, %v1586_v17  ;;  %v666_v29 = vadd.f32 %v1856_v27, %v1586_v17 }
 0x1d6   : > { %v625_v30 = vpop.f32.mrf.mxu0  ;;  %v657_v31 = vpop.f32.mrf.mxu1 }
 0x1d7   : > { %688 = vst [vmem:[#allocation3 + $0x40] sm:$0xff] %v634_v28  ;;  %696 = vst [vmem:[#allocation3 + $0x58] sm:$0xff] %v666_v29  ;;  %v626_v32 = vadd.f32 %v1586_v17, %v625_v30  ;;  %v658_v33 = vadd.f32 %v1586_v17, %v657_v31 }
 0x1d8   : > { %v1851_v34 = vpop.f32.mrf.mxu0  ;;  %v1859_v35 = vpop.f32.mrf.mxu1 }
 0x1d9   : > { %686 = vst [vmem:[#allocation3 + $0x68] sm:$0xff] %v626_v32  ;;  %694 = vst [vmem:[#allocation3 + $0x78] sm:$0xff] %v658_v33  ;;  %v647_v36 = vadd.f32 %v1851_v34, %v1586_v17  ;;  %v679_v37 = vadd.f32 %v1859_v35, %v1586_v17 }
 0x1da   : > { %v638_v38 = vpop.f32.mrf.mxu0  ;;  %v670_v39 = vpop.f32.mrf.mxu1 }
 0x1db   : > { %691 = vst [vmem:[#allocation3 + $0x70] sm:$0xff] %v647_v36  ;;  %699 = vst [vmem:[#allocation3 + $0x60] sm:$0xff] %v679_v37  ;;  %v639_v40 = vadd.f32 %v1586_v17, %v638_v38  ;;  %v671_v41 = vadd.f32 %v1586_v17, %v670_v39 }
 0x1dc   : > { %v1852_v42 = vpop.f32.mrf.mxu0  ;;  %v1860_v43 = vpop.f32.mrf.mxu1 }
 0x1dd   : > { %689 = vst [vmem:[#allocation3 + $0x48] sm:$0xff] %v639_v40  ;;  %697 = vst [vmem:[#allocation3] sm:$0xff] %v671_v41  ;;  %v650_v44 = vadd.f32 %v1852_v42, %v1586_v17  ;;  %v682_v45 = vadd.f32 %v1860_v43, %v1586_v17 }
 0x1de   : > { %v641_v46 = vpop.f32.mrf.mxu0  ;;  %v673_v47 = vpop.f32.mrf.mxu1 }
 0x1df   : > { %692 = vst [vmem:[#allocation3 + $0x38] sm:$0xff] %v650_v44  ;;  %700 = vst [vmem:[#allocation3 + $0x50] sm:$0xff] %v682_v45  ;;  %v642_v48 = vadd.f32 %v1586_v17, %v641_v46  ;;  %v674_v49 = vadd.f32 %v1586_v17, %v673_v47 }
 0x1e1   : > { %690 = vst [vmem:[#allocation3 + $0x30] sm:$0xff] %v642_v48  ;;  %698 = vst [vmem:[#allocation3 + $0x8] sm:$0xff] %v674_v49 }
 0x1e2 PF: > { %s3173_s28 = sld [smem:[#allocation31_spill]] }
 0x1e3   : > { %s3174_s29 = sld [smem:[#allocation30_spill]] }
 0x1e8   : > { %s701_s27 = sld [smem:[#allocation6 + %s3173_s28]] }
 0x1ee   : > { %p1603_p13 = scmp.ge.s32.totalorder %s3174_s29, %s701_s27 }
 0x1f0   : > { %705 = sbr.rel (%p1603_p13) target bundleno = 762 (0x2fa), region = 72 }
 0x1f5   : > { %v2132_v50 = vld [vmem:[%s2912_s14 + $0x78] sm:$0xff]   ;;  %v2134_v52 = vld [vmem:[%s2912_s14 + $0x70] sm:$0xff]   ;;  %v2136_v54 = vld [vmem:[%s2912_s14 + $0x68] sm:$0xff]  }
 0x1f6   : > { %v2133_v51 = vld [vmem:[%s2912_s14 + $0x38] sm:$0xff]   ;;  %1749 = vmatprep.subr.bf16.mxu0 %v2132_v50  ;;  %1909 = vmatprep.subr.bf16.mxu1 %v2132_v50  ;;  %v2135_v53 = vld [vmem:[%s2912_s14 + $0x30] sm:$0xff]   ;;  %v2137_v55 = vld [vmem:[%s2912_s14 + $0x28] sm:$0xff]  }
 0x1f7   : > { %1750 = vmatpush3.bf16.msra.mxu0 %v2133_v51  ;;  %1917 = vmatpush3.bf16.msra.mxu1 %v2133_v51  ;;  %v2138_v56 = vld [vmem:[%s2912_s14 + $0x60] sm:$0xff]   ;;  %v2140_v58 = vld [vmem:[%s2912_s14 + $0x58] sm:$0xff]   ;;  %v2142_v60 = vld [vmem:[%s2912_s14 + $0x50] sm:$0xff]  }
 0x1f8   : > { %1751 = vmatprep.subr.bf16.mxu0 %v2134_v52  ;;  %1910 = vmatprep.subr.bf16.mxu1 %v2134_v52  ;;  %v2139_v57 = vld [vmem:[%s2912_s14 + $0x20] sm:$0xff]   ;;  %v2141_v59 = vld [vmem:[%s2912_s14 + $0x18] sm:$0xff]   ;;  %v2143_v63 = vld [vmem:[%s2912_s14 + $0x10] sm:$0xff]  }
 0x1f9   : > { %v2150_v61 = vld [vmem:[%s2904_s17 + $0x4] ss:$8 sps:$4 sm:$0xff]   ;;  %v2148_v4 = vld [vmem:[%s2904_s17] ss:$8 sps:$4 sm:$0xff]   ;;  %v2154_v6 = vld [vmem:[%s2904_s17 + $0x14] ss:$8 sps:$4 sm:$0xff]  }
 0x1fa   : > { %v2153_v62 = vld [vmem:[%s2904_s17 + $0x44] ss:$8 sps:$4 sm:$0xff]   ;;  %978 = vmatprep.mubr.bf16.mxu0 %v2150_v61  ;;  %v2151_v5 = vld [vmem:[%s2904_s17 + $0x40] ss:$8 sps:$4 sm:$0xff]   ;;  %v2156_v7 = vld [vmem:[%s2904_s17 + $0x54] ss:$8 sps:$4 sm:$0xff]  }
 0x1fb   : > { %1752 = vmatpush3.bf16.msra.mxu0 %v2135_v53  ;;  %1918 = vmatpush3.bf16.msra.mxu1 %v2135_v53  ;;  %v2144_v0 = vld [vmem:[%s2912_s14 + $0x48] sm:$0xff]   ;;  %v2146_v2 = vld [vmem:[%s2912_s14 + $0x40] sm:$0xff]   ;;  %v2158_v8 = vld [vmem:[%s2904_s17 + $0x10] ss:$8 sps:$4 sm:$0xff]  }
 0x1fc   : > { %1753 = vmatprep.subr.bf16.mxu0 %v2136_v54  ;;  %1911 = vmatprep.subr.bf16.mxu1 %v2136_v54  ;;  %v2145_v1 = vld [vmem:[%s2912_s14 + $0x8] sm:$0xff]   ;;  %v2147_v3 = vld [vmem:[%s2912_s14] sm:$0xff]   ;;  %v2159_v9 = vld [vmem:[%s2904_s17 + $0x50] ss:$8 sps:$4 sm:$0xff]  }
 0x1fd   : > { %1010 = vmatprep.mubr.bf16.mxu1 %v2153_v62  ;;  %v2160_v10 = vld [vmem:[%s2904_s17 + $0x24] ss:$8 sps:$4 sm:$0xff]   ;;  %v2164_v12 = vld [vmem:[%s2904_s17 + $0x20] ss:$8 sps:$4 sm:$0xff]   ;;  %v2166_v14 = vld [vmem:[%s2904_s17 + $0x34] ss:$8 sps:$4 sm:$0xff]  }
 0x1fe   : > { %v2162_v11 = vld [vmem:[%s2904_s17 + $0x64] ss:$8 sps:$4 sm:$0xff]   ;;  %v2165_v13 = vld [vmem:[%s2904_s17 + $0x60] ss:$8 sps:$4 sm:$0xff]   ;;  %v2168_v15 = vld [vmem:[%s2904_s17 + $0x74] ss:$8 sps:$4 sm:$0xff]  }
 0x1ff   : > { %1754 = vmatpush3.bf16.msra.mxu0 %v2137_v55  ;;  %1919 = vmatpush3.bf16.msra.mxu1 %v2137_v55  ;;  %v2170_v16 = vld [vmem:[%s2904_s17 + $0x30] ss:$8 sps:$4 sm:$0xff]   ;;  %v714_v22 = vld [vmem:[#allocation2 + $0x40] sm:$0xff] }
 0x200   : > { %1755 = vmatprep.subr.bf16.mxu0 %v2138_v56  ;;  %1912 = vmatprep.subr.bf16.mxu1 %v2138_v56  ;;  %v2171_v17 = vld [vmem:[%s2904_s17 + $0x70] ss:$8 sps:$4 sm:$0xff]   ;;  %v707_v30 = vld [vmem:[#allocation2] sm:$0xff] }
 0x201   : > { %v706_v20 = vld [vmem:[#allocation2 + $0x30] sm:$0xff]  ;;  %v715_v32 = vld [vmem:[#allocation2 + $0x20] sm:$0xff]  ;;  %v708_v40 = vld [vmem:[#allocation2 + $0x58] sm:$0xff] }
 0x202   : > { %v716_v42 = vld [vmem:[#allocation2 + $0x10] sm:$0xff]  ;;  %v709_v50 = vld [vmem:[#allocation2 + $0x18] sm:$0xff]  ;;  %v718_v62 = vld [vmem:[#allocation2 + $0x60] sm:$0xff] }
 0x203   : > { %1756 = vmatpush3.bf16.msra.mxu0 %v2139_v57  ;;  %1920 = vmatpush3.bf16.msra.mxu1 %v2139_v57  ;;  %v717_v52 = vld [vmem:[#allocation2 + $0x38] sm:$0xff] }
 0x204   : > { %1757 = vmatprep.subr.bf16.mxu0 %v2140_v58  ;;  %1913 = vmatprep.subr.bf16.mxu1 %v2140_v58 }
 0x207   : > { %1758 = vmatpush3.bf16.msra.mxu0 %v2141_v59  ;;  %1921 = vmatpush3.bf16.msra.mxu1 %v2141_v59 }
 0x208   : > { %1759 = vmatprep.subr.bf16.mxu0 %v2142_v60  ;;  %1914 = vmatprep.subr.bf16.mxu1 %v2142_v60  ;;  %v710_v60 = vld [vmem:[#allocation2 + $0x50] sm:$0xff] }
 0x20b   : > { %1760 = vmatpush3.bf16.msra.mxu0 %v2143_v63  ;;  %1922 = vmatpush3.bf16.msra.mxu1 %v2143_v63 }
 0x20c   : > { %1761 = vmatprep.subr.bf16.mxu0 %v2144_v0  ;;  %1915 = vmatprep.subr.bf16.mxu1 %v2144_v0 }
 0x20f   : > { %1762 = vmatpush3.bf16.msra.mxu0 %v2145_v1  ;;  %1923 = vmatpush3.bf16.msra.mxu1 %v2145_v1 }
 0x210   : > { %1763 = vmatprep.subr.bf16.mxu0 %v2146_v2  ;;  %1916 = vmatprep.subr.bf16.mxu1 %v2146_v2 }
 0x213   : > { %1764 = vmatpush3.bf16.msra.mxu0 %v2147_v3  ;;  %1924 = vmatpush3.bf16.msra.mxu1 %v2147_v3 }
 0x216   : > { %979 = vmatmul.mubr.bf16.vlgmr.msra.gmra.mxu0 %v2148_v4  ;;  %1011 = vmatmul.mubr.bf16.vlgmr.msra.gmra.mxu1 %v2151_v5 }
 0x217   : > { %986 = vmatprep.mubr.bf16.mxu0 %v2154_v6  ;;  %1018 = vmatprep.mubr.bf16.mxu1 %v2156_v7  ;;  %v711_v6 = vld [vmem:[#allocation2 + $0x68] sm:$0xff] }
 0x21e   : > { %987 = vmatmul.mubr.bf16.gmra.mxu0 %v2158_v8  ;;  %1019 = vmatmul.mubr.bf16.gmra.mxu1 %v2159_v9  ;;  %v719_v8 = vld [vmem:[#allocation2 + $0x70] sm:$0xff] }
 0x21f   : > { %994 = vmatprep.mubr.bf16.mxu0 %v2160_v10  ;;  %1026 = vmatprep.mubr.bf16.mxu1 %v2162_v11 }
 0x226   : > { %995 = vmatmul.mubr.bf16.gmra.mxu0 %v2164_v12  ;;  %1027 = vmatmul.mubr.bf16.gmra.mxu1 %v2165_v13 }
 0x227   : > { %1002 = vmatprep.mubr.bf16.mxu0 %v2166_v14  ;;  %1034 = vmatprep.mubr.bf16.mxu1 %v2168_v15 }
 0x22e   : > { %1003 = vmatmul.mubr.bf16.gmra.mxu0 %v2170_v16  ;;  %1035 = vmatmul.mubr.bf16.gmra.mxu1 %v2171_v17  ;;  %v712_v16 = vld [vmem:[#allocation2 + $0x8] sm:$0xff] }
 0x2d6   : > { %v1765_v18 = vpop.f32.mrf.mxu0  ;;  %v1789_v19 = vpop.f32.mrf.mxu1 }
 0x2d8   : > { %v1766_v21 = vpop.f32.mrf.mxu0  ;;  %v1790_v23 = vpop.f32.mrf.mxu1 }
 0x2d9   : > { %v1767_v24 = vadd.f32 %v1766_v21, %v1765_v18  ;;  %v1791_v25 = vadd.f32 %v1790_v23, %v1789_v19  ;;  %v720_v18 = vld [vmem:[#allocation2 + $0x78] sm:$0xff] }
 0x2da   : > { %v1768_v26 = vpop.f32.mrf.mxu0  ;;  %v1792_v27 = vpop.f32.mrf.mxu1 }
 0x2db   : > { %v1043_v28 = vadd.f32 %v1767_v24, %v706_v20  ;;  %v1051_v29 = vadd.f32 %v1791_v25, %v714_v22 }
 0x2dc   : > { %v1769_v31 = vpop.f32.mrf.mxu0  ;;  %v1793_v33 = vpop.f32.mrf.mxu1 }
 0x2dd   : > { %1059 = vst [vmem:[#allocation2 + $0x30] sm:$0xff] %v1043_v28  ;;  %1067 = vst [vmem:[#allocation2 + $0x40] sm:$0xff] %v1051_v29  ;;  %v1770_v34 = vadd.f32 %v1769_v31, %v1768_v26  ;;  %v1794_v35 = vadd.f32 %v1793_v33, %v1792_v27  ;;  %v713_v26 = vld [vmem:[#allocation2 + $0x48] sm:$0xff] }
 0x2de   : > { %v1771_v36 = vpop.f32.mrf.mxu0  ;;  %v1795_v37 = vpop.f32.mrf.mxu1  ;;  %v721_v28 = vld [vmem:[#allocation2 + $0x28] sm:$0xff] }
 0x2df   : > { %v1044_v38 = vadd.f32 %v1770_v34, %v707_v30  ;;  %v1052_v39 = vadd.f32 %v1794_v35, %v715_v32 }
 0x2e0   : > { %v1772_v41 = vpop.f32.mrf.mxu0  ;;  %v1796_v43 = vpop.f32.mrf.mxu1 }
 0x2e1   : > { %1060 = vst [vmem:[#allocation2] sm:$0xff] %v1044_v38  ;;  %1068 = vst [vmem:[#allocation2 + $0x20] sm:$0xff] %v1052_v39  ;;  %v1773_v44 = vadd.f32 %v1772_v41, %v1771_v36  ;;  %v1797_v45 = vadd.f32 %v1796_v43, %v1795_v37 }
 0x2e2   : > { %v1774_v46 = vpop.f32.mrf.mxu0  ;;  %v1798_v47 = vpop.f32.mrf.mxu1 }
 0x2e3   : > { %v1045_v48 = vadd.f32 %v1773_v44, %v708_v40  ;;  %v1053_v49 = vadd.f32 %v1797_v45, %v716_v42 }
 0x2e4   : > { %v1775_v51 = vpop.f32.mrf.mxu0  ;;  %v1799_v53 = vpop.f32.mrf.mxu1 }
 0x2e5   : > { %1061 = vst [vmem:[#allocation2 + $0x58] sm:$0xff] %v1045_v48  ;;  %1069 = vst [vmem:[#allocation2 + $0x10] sm:$0xff] %v1053_v49  ;;  %v1776_v54 = vadd.f32 %v1775_v51, %v1774_v46  ;;  %v1800_v55 = vadd.f32 %v1799_v53, %v1798_v47 }
 0x2e6   : > { %v1777_v56 = vpop.f32.mrf.mxu0  ;;  %v1801_v57 = vpop.f32.mrf.mxu1 }
 0x2e7   : > { %v1046_v58 = vadd.f32 %v1776_v54, %v709_v50  ;;  %v1054_v59 = vadd.f32 %v1800_v55, %v717_v52 }
 0x2e8   : > { %v1778_v61 = vpop.f32.mrf.mxu0  ;;  %v1802_v63 = vpop.f32.mrf.mxu1 }
 0x2e9   : > { %1062 = vst [vmem:[#allocation2 + $0x18] sm:$0xff] %v1046_v58  ;;  %1070 = vst [vmem:[#allocation2 + $0x38] sm:$0xff] %v1054_v59  ;;  %v1779_v0 = vadd.f32 %v1778_v61, %v1777_v56  ;;  %v1803_v1 = vadd.f32 %v1802_v63, %v1801_v57 }
 0x2ea   : > { %v1780_v2 = vpop.f32.mrf.mxu0  ;;  %v1804_v3 = vpop.f32.mrf.mxu1 }
 0x2eb   : > { %v1047_v4 = vadd.f32 %v1779_v0, %v710_v60  ;;  %v1055_v5 = vadd.f32 %v1803_v1, %v718_v62 }
 0x2ec   : > { %v1781_v7 = vpop.f32.mrf.mxu0  ;;  %v1805_v9 = vpop.f32.mrf.mxu1 }
 0x2ed   : > { %1063 = vst [vmem:[#allocation2 + $0x50] sm:$0xff] %v1047_v4  ;;  %1071 = vst [vmem:[#allocation2 + $0x60] sm:$0xff] %v1055_v5  ;;  %v1782_v10 = vadd.f32 %v1781_v7, %v1780_v2  ;;  %v1806_v11 = vadd.f32 %v1805_v9, %v1804_v3 }
 0x2ee   : > { %v1783_v12 = vpop.f32.mrf.mxu0  ;;  %v1807_v13 = vpop.f32.mrf.mxu1 }
 0x2ef   : > { %v1048_v14 = vadd.f32 %v1782_v10, %v711_v6  ;;  %v1056_v15 = vadd.f32 %v1806_v11, %v719_v8 }
 0x2f0   : > { %v1784_v17 = vpop.f32.mrf.mxu0  ;;  %v1808_v19 = vpop.f32.mrf.mxu1 }
 0x2f1   : > { %1064 = vst [vmem:[#allocation2 + $0x68] sm:$0xff] %v1048_v14  ;;  %1072 = vst [vmem:[#allocation2 + $0x70] sm:$0xff] %v1056_v15  ;;  %v1785_v20 = vadd.f32 %v1784_v17, %v1783_v12  ;;  %v1809_v21 = vadd.f32 %v1808_v19, %v1807_v13 }
 0x2f2   : > { %v1786_v22 = vpop.f32.mrf.mxu0  ;;  %v1810_v23 = vpop.f32.mrf.mxu1 }
 0x2f3   : > { %v1049_v24 = vadd.f32 %v1785_v20, %v712_v16  ;;  %v1057_v25 = vadd.f32 %v1809_v21, %v720_v18 }
 0x2f4   : > { %v1787_v27 = vpop.f32.mrf.mxu0  ;;  %v1811_v29 = vpop.f32.mrf.mxu1 }
 0x2f5   : > { %1065 = vst [vmem:[#allocation2 + $0x8] sm:$0xff] %v1049_v24  ;;  %1073 = vst [vmem:[#allocation2 + $0x78] sm:$0xff] %v1057_v25  ;;  %v1788_v30 = vadd.f32 %v1787_v27, %v1786_v22  ;;  %v1812_v31 = vadd.f32 %v1811_v29, %v1810_v23 }
 0x2f7   : > { %v1050_v32 = vadd.f32 %v1788_v30, %v713_v26  ;;  %v1058_v33 = vadd.f32 %v1812_v31, %v721_v28 }
 0x2f9   : > { %1066 = vst [vmem:[#allocation2 + $0x48] sm:$0xff] %v1050_v32  ;;  %1074 = vst [vmem:[#allocation2 + $0x28] sm:$0xff] %v1058_v33 }
 0x2fa PF: > { %s3175_s17 = sld [smem:[#allocation30_spill]] }
 0x300   : > { %p1636_p4 = scmp.ne.s32.totalorder %s3175_s17, 1 }
 0x302   : > { %1078 = sbr.rel (%p1636_p4) target bundleno = 1022 (0x3fe), region = 76 }
 0x307   : > { %v2172_v34 = vld [vmem:[#allocation15 + $0x38] sm:$0xff]   ;;  %v2173_v35 = vld [vmem:[#allocation15 + $0x30] sm:$0xff]   ;;  %v2174_v36 = vld [vmem:[#allocation15 + $0x28] sm:$0xff]  }
 0x308   : > { %1861 = vmatprep.subr.bf16.mxu0 %v2172_v34  ;;  %1925 = vmatprep.subr.bf16.mxu1 %v2172_v34  ;;  %v2175_v37 = vld [vmem:[#allocation15 + $0x20] sm:$0xff]   ;;  %v1095_v38 = vld [vmem:[#allocation2 + $0x30] sm:$0xff]  ;;  %v2176_v44 = vld [vmem:[#allocation15 + $0x18] sm:$0xff]  }
 0x309   : > { %1862 = vmatpush3.bf16.msra.mxu0 %v2172_v34  ;;  %1933 = vmatpush3.bf16.msra.mxu1 %v2172_v34  ;;  %v1096_v39 = vld [vmem:[#allocation2] sm:$0xff]  ;;  %v2177_v45 = vld [vmem:[#allocation15 + $0x10] sm:$0xff]   ;;  %v2178_v46 = vld [vmem:[#allocation15 + $0x8] sm:$0xff]  }
 0x30a   : > { %1863 = vmatprep.subr.bf16.mxu0 %v2173_v35  ;;  %1926 = vmatprep.subr.bf16.mxu1 %v2173_v35  ;;  %v1103_v40 = vld [vmem:[#allocation2 + $0x40] sm:$0xff]  ;;  %v1111_v41 = vpack.c.bf16 %v1096_v39, %v1095_v38  ;;  %v1097_v48 = vld [vmem:[#allocation2 + $0x58] sm:$0xff]  ;;  %v1105_v50 = vld [vmem:[#allocation2 + $0x10] sm:$0xff] }
 0x30b   : > { %v1104_v42 = vld [vmem:[#allocation2 + $0x20] sm:$0xff]  ;;  %v1098_v49 = vld [vmem:[#allocation2 + $0x18] sm:$0xff]  ;;  %v1099_v52 = vld [vmem:[#allocation2 + $0x50] sm:$0xff] }
 0x30c   : > { %v1115_v43 = vpack.c.bf16 %v1104_v42, %v1103_v40  ;;  %1877 = vmatprep.mubr.bf16.mxu0 %v1111_v41  ;;  %v2179_v47 = vld [vmem:[#allocation15] sm:$0xff]   ;;  %v1106_v51 = vld [vmem:[#allocation2 + $0x38] sm:$0xff]  ;;  %v1100_v53 = vld [vmem:[#allocation2 + $0x68] sm:$0xff]  ;;  %v1112_v56 = vpack.c.bf16 %v1098_v49, %v1097_v48 }
 0x30d   : > { %1864 = vmatpush3.bf16.msra.mxu0 %v2173_v35  ;;  %1934 = vmatpush3.bf16.msra.mxu1 %v2173_v35  ;;  %v1107_v54 = vld [vmem:[#allocation2 + $0x60] sm:$0xff]  ;;  %v1108_v55 = vld [vmem:[#allocation2 + $0x70] sm:$0xff]  ;;  %v1116_v57 = vpack.c.bf16 %v1106_v51, %v1105_v50  ;;  %v1113_v58 = vpack.c.bf16 %v1100_v53, %v1099_v52  ;;  %v1101_v60 = vld [vmem:[#allocation2 + $0x8] sm:$0xff] }
 0x30e   : > { %1865 = vmatprep.subr.bf16.mxu0 %v2174_v36  ;;  %1927 = vmatprep.subr.bf16.mxu1 %v2174_v36  ;;  %v1117_v59 = vpack.c.bf16 %v1108_v55, %v1107_v54  ;;  %v1102_v61 = vld [vmem:[#allocation2 + $0x48] sm:$0xff]  ;;  %v1109_v62 = vld [vmem:[#allocation2 + $0x78] sm:$0xff]  ;;  %v1081_v2 = vld [vmem:[#allocation3 + $0x10] sm:$0xff] }
 0x30f   : > { %1885 = vmatprep.mubr.bf16.mxu1 %v1115_v43  ;;  %v1110_v63 = vld [vmem:[#allocation2 + $0x28] sm:$0xff]  ;;  %v1114_v0 = vpack.c.bf16 %v1102_v61, %v1101_v60  ;;  %v1089_v3 = vld [vmem:[#allocation3 + $0x18] sm:$0xff]  ;;  %v1087_v7 = vld [vmem:[#allocation3 + $0x20] sm:$0xff] }
 0x310   : > { %v1118_v1 = vpack.c.bf16 %v1110_v63, %v1109_v62  ;;  %v1079_v6 = vld [vmem:[#allocation3 + $0x28] sm:$0xff]  ;;  %v1082_v12 = vld [vmem:[#allocation3 + $0x40] sm:$0xff]  ;;  %v1090_v13 = vld [vmem:[#allocation3 + $0x58] sm:$0xff] }
 0x311   : > { %1866 = vmatpush3.bf16.msra.mxu0 %v2174_v36  ;;  %1935 = vmatpush3.bf16.msra.mxu1 %v2174_v36  ;;  %v1080_v18 = vld [vmem:[#allocation3 + $0x68] sm:$0xff]  ;;  %v1088_v19 = vld [vmem:[#allocation3 + $0x78] sm:$0xff]  ;;  %v1085_v30 = vld [vmem:[#allocation3 + $0x70] sm:$0xff] }
 0x312   : > { %1867 = vmatprep.subr.bf16.mxu0 %v2175_v37  ;;  %1928 = vmatprep.subr.bf16.mxu1 %v2175_v37  ;;  %v1093_v31 = vld [vmem:[#allocation3 + $0x60] sm:$0xff]  ;;  %v1083_v40 = vld [vmem:[#allocation3 + $0x48] sm:$0xff]  ;;  %v1084_v54 = vld [vmem:[#allocation3 + $0x30] sm:$0xff] }
 0x313   : > { %v1091_v41 = vld [vmem:[#allocation3] sm:$0xff]  ;;  %v1092_v55 = vld [vmem:[#allocation3 + $0x8] sm:$0xff] }
 0x315   : > { %1868 = vmatpush3.bf16.msra.mxu0 %v2175_v37  ;;  %1936 = vmatpush3.bf16.msra.mxu1 %v2175_v37 }
 0x316   : > { %1869 = vmatprep.subr.bf16.mxu0 %v2176_v44  ;;  %1929 = vmatprep.subr.bf16.mxu1 %v2176_v44 }
 0x319   : > { %1870 = vmatpush3.bf16.msra.mxu0 %v2176_v44  ;;  %1937 = vmatpush3.bf16.msra.mxu1 %v2176_v44 }
 0x31a   : > { %1871 = vmatprep.subr.bf16.mxu0 %v2177_v45  ;;  %1930 = vmatprep.subr.bf16.mxu1 %v2177_v45 }
 0x31d   : > { %1872 = vmatpush3.bf16.msra.mxu0 %v2177_v45  ;;  %1938 = vmatpush3.bf16.msra.mxu1 %v2177_v45 }
 0x31e   : > { %1873 = vmatprep.subr.bf16.mxu0 %v2178_v46  ;;  %1931 = vmatprep.subr.bf16.mxu1 %v2178_v46 }
 0x321   : > { %1874 = vmatpush3.bf16.msra.mxu0 %v2178_v46  ;;  %1939 = vmatpush3.bf16.msra.mxu1 %v2178_v46  ;;  %v1086_v46 = vld [vmem:[#allocation3 + $0x38] sm:$0xff] }
 0x322   : > { %1875 = vmatprep.subr.bf16.mxu0 %v2179_v47  ;;  %1932 = vmatprep.subr.bf16.mxu1 %v2179_v47 }
 0x325   : > { %1876 = vmatpush3.bf16.msra.mxu0 %v2179_v47  ;;  %1940 = vmatpush3.bf16.msra.mxu1 %v2179_v47  ;;  %v1094_v47 = vld [vmem:[#allocation3 + $0x50] sm:$0xff] }
 0x328   : > { %1878 = vmatmul.mubr.bf16.vlgmr.msra.gmra.mxu0 %v1112_v56  ;;  %1886 = vmatmul.mubr.bf16.vlgmr.msra.gmra.mxu1 %v1116_v57 }
 0x329   : > { %1881 = vmatprep.mubr.bf16.mxu0 %v1113_v58  ;;  %1889 = vmatprep.mubr.bf16.mxu1 %v1117_v59 }
 0x330   : > { %1882 = vmatmul.mubr.bf16.gmra.mxu0 %v1114_v0  ;;  %1890 = vmatmul.mubr.bf16.gmra.mxu1 %v1118_v1 }
 0x3e8   : > { %v1879_v4 = vpop.f32.mrf.mxu0  ;;  %v1887_v5 = vpop.f32.mrf.mxu1 }
 0x3e9   : > { %v1282_v8 = vadd.f32 %v1879_v4, %v1081_v2  ;;  %v1290_v9 = vadd.f32 %v1887_v5, %v1089_v3 }
 0x3ea   : > { %v1217_v10 = vpop.f32.mrf.mxu0  ;;  %v1249_v11 = vpop.f32.mrf.mxu1 }
 0x3eb   : > { %v1280_v14 = vadd.f32 %v1217_v10, %v1079_v6  ;;  %v1288_v15 = vadd.f32 %v1249_v11, %v1087_v7  ;;  %v1298_v22 = vmax.f32 %v1282_v8, 0.0  ;;  %v1306_v23 = vmax.f32 %v1290_v9, 0.0 }
 0x3ec   : > { %v1880_v16 = vpop.f32.mrf.mxu0  ;;  %v1888_v17 = vpop.f32.mrf.mxu1 }
 0x3ed   : > { %v1283_v20 = vadd.f32 %v1880_v16, %v1082_v12  ;;  %v1291_v21 = vadd.f32 %v1888_v17, %v1090_v13  ;;  %v1296_v32 = vmax.f32 %v1280_v14, 0.0  ;;  %v1304_v33 = vmax.f32 %v1288_v15, 0.0 }
 0x3ee   : > { %v1220_v24 = vpop.f32.mrf.mxu0  ;;  %v1252_v25 = vpop.f32.mrf.mxu1 }
 0x3ef   : > { %v1299_v26 = vmax.f32 %v1283_v20, 0.0  ;;  %v1307_v27 = vmax.f32 %v1291_v21, 0.0  ;;  %v1281_v28 = vadd.f32 %v1220_v24, %v1080_v18  ;;  %v1289_v29 = vadd.f32 %v1252_v25, %v1088_v19 }
 0x3f0   : > { %v1883_v34 = vpop.f32.mrf.mxu0  ;;  %v1891_v35 = vpop.f32.mrf.mxu1 }
 0x3f1   : > { %v1694_v36 = vpack.c.bf16 %v1299_v26, %v1298_v22  ;;  %v1714_v37 = vpack.c.bf16 %v1307_v27, %v1306_v23  ;;  %v1297_v38 = vmax.f32 %v1281_v28, 0.0  ;;  %v1305_v39 = vmax.f32 %v1289_v29, 0.0 }
 0x3f2   : > { %v1286_v42 = vadd.f32 %v1883_v34, %v1085_v30  ;;  %v1294_v43 = vadd.f32 %v1891_v35, %v1093_v31  ;;  %v1233_v44 = vpop.f32.mrf.mxu0  ;;  %v1265_v45 = vpop.f32.mrf.mxu1 }
 0x3f3   : > { %1726 = vst [vmem:[%s2931_s11 + $0x8] sm:$0xff] %v1694_v36   ;;  %1730 = vst [vmem:[%s2931_s11 + $0x28] sm:$0xff] %v1714_v37   ;;  %v1689_v48 = vpack.c.bf16 %v1297_v38, %v1296_v32  ;;  %v1709_v49 = vpack.c.bf16 %v1305_v39, %v1304_v33  ;;  %v1284_v50 = vadd.f32 %v1233_v44, %v1083_v40 }
 0x3f4   : > { %v1292_v51 = vadd.f32 %v1265_v45, %v1091_v41  ;;  %v1884_v52 = vpop.f32.mrf.mxu0  ;;  %v1892_v53 = vpop.f32.mrf.mxu1  ;;  %v1302_v58 = vmax.f32 %v1286_v42, 0.0  ;;  %v1310_v59 = vmax.f32 %v1294_v43, 0.0 }
 0x3f5   : > { %1690 = vst [vmem:[%s2931_s11] sm:$0xff] %v1689_v48   ;;  %1729 = vst [vmem:[%s2931_s11 + $0x20] sm:$0xff] %v1709_v49   ;;  %v1287_v56 = vadd.f32 %v1884_v52, %v1086_v46  ;;  %v1295_v57 = vadd.f32 %v1892_v53, %v1094_v47  ;;  %v1300_v2 = vmax.f32 %v1284_v50, 0.0 }
 0x3f6   : > { %v1236_v60 = vpop.f32.mrf.mxu0  ;;  %v1268_v61 = vpop.f32.mrf.mxu1  ;;  %v1308_v3 = vmax.f32 %v1292_v51, 0.0 }
 0x3f7   : > { %v1303_v62 = vmax.f32 %v1287_v56, 0.0  ;;  %v1311_v63 = vmax.f32 %v1295_v57, 0.0  ;;  %v1285_v0 = vadd.f32 %v1236_v60, %v1084_v54  ;;  %v1293_v1 = vadd.f32 %v1268_v61, %v1092_v55 }
 0x3f9   : > { %v1704_v4 = vpack.c.bf16 %v1303_v62, %v1302_v58  ;;  %v1724_v5 = vpack.c.bf16 %v1311_v63, %v1310_v59  ;;  %v1301_v6 = vmax.f32 %v1285_v0, 0.0  ;;  %v1309_v7 = vmax.f32 %v1293_v1, 0.0 }
 0x3fb   : > { %1728 = vst [vmem:[%s2931_s11 + $0x18] sm:$0xff] %v1704_v4   ;;  %1732 = vst [vmem:[%s2931_s11 + $0x38] sm:$0xff] %v1724_v5   ;;  %v1699_v8 = vpack.c.bf16 %v1301_v6, %v1300_v2  ;;  %v1719_v9 = vpack.c.bf16 %v1309_v7, %v1308_v3 }
 0x3fd   : > { %1727 = vst [vmem:[%s2931_s11 + $0x10] sm:$0xff] %v1699_v8   ;;  %1731 = vst [vmem:[%s2931_s11 + $0x30] sm:$0xff] %v1719_v9  }
 0x3fe PF: > { %s3176_s30 = sld [smem:[#allocation31_spill]]  ;;  %s1406_s12 = sshll.u32 %s2931_s11, 4  ;;  %s2995_s12 = int_to_ptr.vmem [resolvable:$true] %s1406_s12 }
 0x3ff   : > { %s3178_s10 = sld [smem:[#allocation45_spill]]  ;;  %s2999_s21 = scalar_lea.sflag [#allocation9], %s372_s4 }
 0x400   : > { %s2336_s22 = scalar_lea.vmem %s2995_s12, 1024  ;;  %s2509_s2 = smov [#allocation16]  }
 0x401   : > { %p2337_p7 = scmp.ne.s32.totalorder %s2995_s12, %s2336_s22  ;;  %s2340_s25 = sshll.u32 %s2509_s2, 4  ;;  %s2341_s25 = int_to_ptr.vmem [resolvable:$false] %s2340_s25 }
 0x402   : > { %s2342_s3 = scalar_lea.vmem %s2341_s25, 2048  ;;  %p2343_p5 = scmp.lt.s32.totalorder %s2995_s12, %s2341_s25 }
 0x403   : > { %p2338_p12 = pnand %p2337_p7, %p2864_p10  ;;  %p2344_p9 = scmp.lt.s32.totalorder %s2342_s3, %s2336_s22 }
 0x404   : > { %s1685_s26 = sshll.u32 %s3176_s30, 10 }
 0x405   : > { %s2992_s14 = scalar_lea.hbm %s3178_s10, %s1685_s26  ;;  %p2339_p1 = pneg %p2338_p12 }
 0x406   : > { %p2345_p11 = por %p2344_p9, %p2343_p5 }
 0x408   : > { %p2346_p3 = pnand %p2345_p11, %p2339_p1 }
 0x40a   : > { %2349 = shalt.err (!%p2346_p3)
}
 0x40b   : > { %s2350_s4 = scalar_lea.hbm %s2992_s14, 1024  ;;  %s2354_s28 = scalar_lea.hbm %s3178_s10, 2048 }
 0x40c   : > { %p2351_p8 = scmp.ne.s32.totalorder %s2992_s14, %s2350_s4  ;;  %p2355_p13 = scmp.lt.s32.totalorder %s2992_s14, %s3178_s10 }
 0x40d   : > { %p2356_p4 = scmp.lt.s32.totalorder %s2354_s28, %s2350_s4 }
 0x40e   : > { %p2352_p2 = pnand %p2351_p8, %p2864_p10 }
 0x40f   : > { %p2357_p7 = por %p2356_p4, %p2355_p13 }
 0x410   : > { %p2353_p6 = pneg %p2352_p2 }
 0x412   : > { %p2358_p12 = pnand %p2357_p7, %p2353_p6 }
 0x414   : > { %2361 = shalt.err (!%p2358_p12)
}
 0x415   : > { %s2510_s17 = smov 64   ;;  %s2511_s30 = smov 4  }
 0x416   : > { %1959 = dma.vmem_to_hbm [thread:$0]  (%p2864_p10), %s2995_s12, 1024, %s2992_s14, %s2999_s21, %s2510_s17, %s2510_s17, %s2511_s30  }
 0x417 PF: > { %s3179_s15 = sld [smem:[#allocation27_spill]]  ;;  %p1991_p1 = scmp.ge.s32.totalorder %s2494_s24, 2 }
 0x419   : > { %p1983_p5 = pnand %p1991_p1, %p2877_p0 }
 0x41b   : > { %p1984_p9 = pneg %p1983_p5 }
 0x41d   : > { %s1421_s26 = sand.u32 1, %s3179_s15  }
 0x41e   : > { %s1422_s5 = scalar_lea.sflag [#allocation9], %s1421_s26 }
 0x41f   : > { %2437 = dma.done.wait (%p1984_p9), %s1422_s5, 1024  }
 0x420   : > { %2439 = vsyncadd (%p1984_p9), %s1422_s5, 4294966272  ;;  %s36_s24 = sadd.s32 1, %s2494_s24   ;;  %s3181_s0 = sld [smem:[#allocation28_spill]] }
 0x421   : > { %p3027_p11 = scmp.ge.s32.totalorder %s36_s24, 6   ;;  %s3182_s14 = sld [smem:[#allocation29_spill]] }
 0x422   : > { %s3183_s6 = sld [smem:[#allocation37_spill]]  ;;  %s3187_s1 = smov %s2450_s13 }
 0x423   : > { %s3184_s12 = sld [smem:[#allocation32_spill]]  ;;  %s3188_s13 = smov %s2846_s8 }
 0x424   : > { %s3185_s22 = sld [smem:[#allocation34_spill]]  ;;  %s3189_s15 = smov %s2462_s16 }
 0x425   : > { %s3186_s2 = sld [smem:[#allocation35_spill]]  ;;  %s3190_s16 = smov %s2725_s20 }
 0x426   : > { %s3191_s17 = smov %s2470_s18  ;;  %s3192_s18 = smov %s2474_s19 }
 0x427   : > { %s3195_s21 = smov %s2490_s23  ;;  %35 = sbr.rel (!%p3027_p11) target bundleno = 30 (0x1e), region = 133 }
 0x428   : > { %s3193_s19 = smov %s3183_s6 }
 0x429   : > { %s3194_s20 = smov %s3184_s12 }
 0x42b   : > { %s3196_s23 = smov %s3186_s2 }
 0x42c   :  { %1427 = vsyncpa [#allocation8], 1 }
 0x42d   :  { %1429 = vsyncpa [#allocation8 + $0x1], 1 }
 0x42e   :  { %1430 = vsyncpa [#allocation11], 1 }
 0x42f   :  { %1432 = vsyncpa [#allocation11 + $0x1], 1 }
 0x430   :  { %1433 = vsyncpa [#allocation14], 1 }
 0x431   :  { %1434 = vsyncpa [#allocation9], 1 }
 0x432   :  { %1436 = vsyncpa [#allocation9 + $0x1], 1 }

</bundles_post_ra>
